<compile_context>
chip_gen: v6e
topology: v6e:2x2x1
jax: 0.10.0
libtpu: 0.0.40
codegen_flags: <defaults>
</compile_context>

<pallas_src>
import math

import jax
import jax.numpy as jnp
from jax.experimental import pallas as pl
from jax.experimental.pallas import tpu as pltpu


def _flash_mha_kernel(q_ref, k_ref, v_ref, wo_ref, bo_ref, o_ref,
                      m_sc, l_sc, acc_sc, ctx_sc):
    """One (batch, query-tile, kv-tile) grid step.

    q_ref:   (1, H, TQ, d_k) bf16   (1/sqrt(d_k) already folded in)
    k_ref:   (1, H, TK, d_k) bf16
    v_ref:   (1, H, TK, d_k) bf16
    wo_ref:  (D, Dp)         bf16   (output lane-padded to Dp)
    bo_ref:  (1, Dp)         f32
    o_ref:   (1, TQ, Dp)     f32
    m_sc:    (H, TQ, 1)      f32    running max
    l_sc:    (H, TQ, 1)      f32    running denominator
    acc_sc:  (H, TQ, d_k)    f32    running (unnormalized) context
    ctx_sc:  (TQ, D)         bf16   concatenated normalized context
    """
    num_heads = q_ref.shape[1]
    d_k = q_ref.shape[3]

    ki = pl.program_id(2)
    n_kt = pl.num_programs(2)

    @pl.when(ki == 0)
    def _():
        m_sc[...] = jnp.full(m_sc.shape, -jnp.inf, m_sc.dtype)
        l_sc[...] = jnp.zeros(l_sc.shape, l_sc.dtype)
        acc_sc[...] = jnp.zeros(acc_sc.shape, acc_sc.dtype)

    # H is small and static; slicing the leading axis of refs is free.
    for h in range(num_heads):
        qh = q_ref[0, h]                              # (TQ, d_k) bf16
        kh = k_ref[0, h]                              # (TK, d_k) bf16
        vh = v_ref[0, h]                              # (TK, d_k) bf16

        # scores (TQ, TK): contract the d_k axes directly (no transpose).
        s = jax.lax.dot_general(
            qh, kh,
            dimension_numbers=(((1,), (1,)), ((), ())),
            preferred_element_type=jnp.float32)

        m_prev = m_sc[h]                              # (TQ, 1)
        m_new = jnp.maximum(m_prev, jnp.max(s, axis=-1, keepdims=True))
        alpha = jnp.exp(m_prev - m_new)               # rescale factor (TQ, 1)
        p = jnp.exp(s - m_new)                        # (TQ, TK) f32, un-normalized

        l_sc[h] = alpha * l_sc[h] + jnp.sum(p, axis=-1, keepdims=True)
        acc_sc[h] = alpha * acc_sc[h] + jnp.dot(
            p.astype(jnp.bfloat16), vh, preferred_element_type=jnp.float32)
        m_sc[h] = m_new

    @pl.when(ki == n_kt - 1)
    def _():
        # Deferred softmax normalization (EUP reciprocal, TQ*d_k mults per head)
        # + static lane-offset stores into the (TQ, D) context scratch.
        for h in range(num_heads):
            inv_l = pl.reciprocal(l_sc[h], approx=True)             # (TQ, 1)
            ctx_sc[:, h * d_k:(h + 1) * d_k] = (
                acc_sc[h] * inv_l).astype(ctx_sc.dtype)
        # Single full-depth output projection: (TQ, D) @ (D, Dp).
        out = jnp.dot(ctx_sc[...], wo_ref[...],
                      preferred_element_type=jnp.float32)
        o_ref[0] = (out + bo_ref[...]).astype(o_ref.dtype)


def _physical_vmem_bytes():
    try:
        return int(pltpu.get_tpu_info().vmem_capacity_bytes)
    except Exception:
        return 64 << 20  # conservative: v7x per-TensorCore VMEM


def multi_head_attention(q, k, v, params, *, num_heads, tq=128, tk=128):
    """q, k, v: [B, S, D] float32. params: (D,D) weights, (1,D) biases (y = x@W + b)."""
    B, S, D = q.shape
    assert D % num_heads == 0, "d_model must be divisible by num_heads"
    d_k = D // num_heads
    TQ = min(S, tq)
    TK = min(S, tk)
    assert S % TQ == 0 and S % TK == 0, "seq len must be divisible by the tiles"
    n_qt = S // TQ
    n_kt = S // TK

    Dp = 128 * pl.cdiv(D, 128)                      # lane-dense output width
    scale = 1.0 / math.sqrt(float(d_k))

    # ---- hoisted Q/K/V projections (plain XLA GEMMs, once per batch) ---------
    def proj(x, w, b):
        y = jnp.dot(x.astype(jnp.bfloat16), w.astype(jnp.bfloat16),
                    preferred_element_type=jnp.float32) + b
        return y                                     # f32 (B, S, D)

    def to_heads(x):                                 # (B, S, D) -> (B, H, S, d_k) bf16
        return jnp.transpose(
            x.reshape(B, S, num_heads, d_k), (0, 2, 1, 3)).astype(jnp.bfloat16)

    q_h = to_heads(proj(q, params["wq"], params["bq"]) * scale)  # fold 1/sqrt(d_k) in f32
    k_h = to_heads(proj(k, params["wk"], params["bk"]))
    v_h = to_heads(proj(v, params["wv"], params["bv"]))

    # Output projection weights: full-depth (D, Dp), lane-padded, bf16.
    wo_p = jnp.zeros((D, Dp), jnp.float32).at[:, :D].set(params["wo"])
    wo_p = wo_p.astype(jnp.bfloat16)
    bo_p = jnp.zeros((1, Dp), jnp.float32).at[:, :D].set(params["bo"])

    # ---- block specs ----------------------------------------------------------
    q_spec = pl.BlockSpec((1, num_heads, TQ, d_k), lambda b, qi, ki: (b, 0, qi, 0))
    k_spec = pl.BlockSpec((1, num_heads, TK, d_k), lambda b, qi, ki: (b, 0, ki, 0))
    v_spec = pl.BlockSpec((1, num_heads, TK, d_k), lambda b, qi, ki: (b, 0, ki, 0))
    wo_spec = pl.BlockSpec((D, Dp), lambda b, qi, ki: (0, 0))
    bo_spec = pl.BlockSpec((1, Dp), lambda b, qi, ki: (0, 0))
    out_spec = pl.BlockSpec((1, TQ, Dp), lambda b, qi, ki: (b, qi, 0))

    # ---- advisory cost estimate (attention + out-proj only; proj is hoisted) --
    flops = 4 * B * num_heads * S * S * d_k + 2 * B * S * D * Dp
    transcendentals = B * num_heads * S * S
    bytes_accessed = (B * S * D * 2                    # Q read once
                      + 2 * B * n_qt * S * D * 2       # K, V streamed per query tile
                      + D * Dp * 2 + Dp * 4            # wo, bo
                      + B * S * Dp * 4)                # output

    # ---- generation-aware VMEM budget -----------------------------------------
    dkp = 128 * pl.cdiv(d_k, 128)                      # lane-padded d_k
    per_buf = (num_heads * TQ * dkp * 2                # q block (bf16)
               + 2 * num_heads * TK * dkp * 2          # k + v blocks
               + D * Dp * 2 + Dp * 4                   # wo + bo
               + TQ * Dp * 4)                          # out block (f32)
    scratch_bytes = (2 * num_heads * TQ * 128 * 4      # m, l (lane-padded)
                     + num_heads * TQ * dkp * 4        # acc
                     + TQ * max(D, 128) * 2)           # ctx (bf16)
    phys_vmem = _physical_vmem_bytes()
    # 2x: double-buffered blocks; another 2x headroom for compiler intermediates
    # ((TQ, TK) score/exp tiles, spills).  Cap at 85% of physical VMEM so v7x
    # keeps headroom under 64 MiB while v5e/v6e may exceed 64 MiB.
    vmem_limit = int(min(max(32 << 20, 2 * (2 * per_buf + scratch_bytes)),
                         int(phys_vmem * 0.85)))

    out_padded = pl.pallas_call(
        _flash_mha_kernel,
        out_shape=jax.ShapeDtypeStruct((B, S, Dp), q.dtype),
        grid_spec=pltpu.PrefetchScalarGridSpec(
            num_scalar_prefetch=0,
            grid=(B, n_qt, n_kt),
            in_specs=[q_spec, k_spec, v_spec, wo_spec, bo_spec],
            out_specs=out_spec,
            scratch_shapes=[
                pltpu.VMEM((num_heads, TQ, 1), jnp.float32),     # m
                pltpu.VMEM((num_heads, TQ, 1), jnp.float32),     # l
                pltpu.VMEM((num_heads, TQ, d_k), jnp.float32),   # acc
                pltpu.VMEM((TQ, D), jnp.bfloat16),               # ctx
            ],
        ),
        compiler_params=pltpu.CompilerParams(
            dimension_semantics=("parallel", "parallel", "arbitrary"),
            vmem_limit_bytes=vmem_limit),
        cost_estimate=pl.CostEstimate(
            flops=flops,
            transcendentals=transcendentals,
            bytes_accessed=bytes_accessed),
    )(q_h, k_h, v_h, wo_p, bo_p)

    return out_padded[..., :D]


def _reference(q, k, v, params, *, num_heads):
    """Pure-JAX f32 reference mirroring the PyTorch forward (mask/RoPE disabled)."""
    B, S, D = q.shape
    d_k = D // num_heads

    def proj(x, w, b):
        return x @ w + b[0]

    Q = proj(q, params["wq"], params["bq"]).reshape(B, S, num_heads, d_k).transpose(0, 2, 1, 3)
    K = proj(k, params["wk"], params["bk"]).reshape(B, S, num_heads, d_k).transpose(0, 2, 1, 3)
    V = proj(v, params["wv"], params["bv"]).reshape(B, S, num_heads, d_k).transpose(0, 2, 1, 3)
    scores = jnp.einsum("bhqd,bhkd->bhqk", Q, K) / math.sqrt(d_k)
    attn = jax.nn.softmax(scores, axis=-1)
    ctx = jnp.einsum("bhqk,bhkd->bhqd", attn, V).transpose(0, 2, 1, 3).reshape(B, S, D)
    return ctx @ params["wo"] + params["bo"][0]


if __name__ == "__main__":
    B, S, D, H = 2, 8, 32, 4

    key = jax.random.PRNGKey(0)
    ks = jax.random.split(key, 11)

    # Deterministic synthetic parameters (nn.Linear-like scale).
    lim = 1.0 / math.sqrt(D)
    params = {
        "wq": jax.random.uniform(ks[0], (D, D), jnp.float32, -lim, lim),
        "wk": jax.random.uniform(ks[1], (D, D), jnp.float32, -lim, lim),
        "wv": jax.random.uniform(ks[2], (D, D), jnp.float32, -lim, lim),
        "wo": jax.random.uniform(ks[3], (D, D), jnp.float32, -lim, lim),
        "bq": jax.random.uniform(ks[4], (1, D), jnp.float32, -lim, lim),
        "bk": jax.random.uniform(ks[5], (1, D), jnp.float32, -lim, lim),
        "bv": jax.random.uniform(ks[6], (1, D), jnp.float32, -lim, lim),
        "bo": jax.random.uniform(ks[7], (1, D), jnp.float32, -lim, lim),
    }

    q = jax.random.normal(ks[8], (B, S, D), jnp.float32)
    k = jax.random.normal(ks[9], (B, S, D), jnp.float32)
    v = jax.random.normal(ks[10], (B, S, D), jnp.float32)

    out = multi_head_attention(q, k, v, params, num_heads=H)
    out = jax.block_until_ready(out)

    ref = _reference(q, k, v, params, num_heads=H)
    assert out.shape == (B, S, D)
    # bf16 MXU operands (f32 accumulation) + approx reciprocal -> looser tolerance
    # than the pure-f32 reference.
    assert jnp.allclose(out, ref, atol=5e-2, rtol=5e-2), "mismatch vs reference"

    print("KERNEL_OK")
</pallas_src>

<mosaic_0001>
module attributes {stable_mosaic.version = 11 : i64} {
  func.func @_flash_mha_kernel(%arg0: i32, %arg1: i32, %arg2: i32, %arg3: memref<1x4x8x8xbf16, #tpu.memory_space<vmem>>, %arg4: memref<1x4x8x8xbf16, #tpu.memory_space<vmem>>, %arg5: memref<1x4x8x8xbf16, #tpu.memory_space<vmem>>, %arg6: memref<32x128xbf16, #tpu.memory_space<vmem>>, %arg7: memref<1x128xf32, #tpu.memory_space<vmem>>, %arg8: memref<1x8x128xf32, #tpu.memory_space<vmem>>, %arg9: memref<4x8x1xf32, #tpu.memory_space<vmem>>, %arg10: memref<4x8x1xf32, #tpu.memory_space<vmem>>, %arg11: memref<4x8x8xf32, #tpu.memory_space<vmem>>, %arg12: memref<8x32xbf16, #tpu.memory_space<vmem>>) attributes {dimension_semantics = [#tpu.dimension_semantics<parallel>, #tpu.dimension_semantics<parallel>, #tpu.dimension_semantics<arbitrary>], iteration_bounds = array<i64: 2, 1, 1>, scalar_prefetch = 0 : i64, scratch_operands = 4 : i64, tpu.core_type = #tpu.core_type<tc>, window_params = [{transform_indices = @transform_0, window_bounds = array<i64: 1, 4, 8, 8>}, {transform_indices = @transform_1, window_bounds = array<i64: 1, 4, 8, 8>}, {transform_indices = @transform_2, window_bounds = array<i64: 1, 4, 8, 8>}, {pipeline_mode = #tpu.pipeline_mode<synchronous>, transform_indices = @transform_3, window_bounds = array<i64: 32, 128>}, {pipeline_mode = #tpu.pipeline_mode<synchronous>, transform_indices = @transform_4, window_bounds = array<i64: 1, 128>}, {transform_indices = @transform_5, window_bounds = array<i64: 1, 8, 128>}]} {
    %c0_i32 = arith.constant 0 : i32
    %0 = arith.cmpi eq, %arg2, %c0_i32 : i32
    %1 = arith.extui %0 : i1 to i32
    %c0_i32_0 = arith.constant 0 : i32
    %2 = arith.cmpi ne, %1, %c0_i32_0 : i32
    scf.if %2 {
      %cst_134 = arith.constant 0xFF800000 : f32
      %162 = vector.broadcast %cst_134 : f32 to vector<4x8x1xf32>
      %c0_135 = arith.constant 0 : index
      %c0_136 = arith.constant 0 : index
      %c0_137 = arith.constant 0 : index
      %163 = vector.load %arg9[%c0_135, %c0_136, %c0_137] : memref<4x8x1xf32, #tpu.memory_space<vmem>>, vector<4x8x1xf32>
      tpu.vector_store %arg9[%c0_135, %c0_136, %c0_137], %162 {strides = array<i32>} : memref<4x8x1xf32, #tpu.memory_space<vmem>>, vector<4x8x1xf32>,
      %cst_138 = arith.constant 0.000000e+00 : f32
      %164 = vector.broadcast %cst_138 : f32 to vector<4x8x1xf32>
      %c0_139 = arith.constant 0 : index
      %c0_140 = arith.constant 0 : index
      %c0_141 = arith.constant 0 : index
      %165 = vector.load %arg10[%c0_139, %c0_140, %c0_141] : memref<4x8x1xf32, #tpu.memory_space<vmem>>, vector<4x8x1xf32>
      tpu.vector_store %arg10[%c0_139, %c0_140, %c0_141], %164 {strides = array<i32>} : memref<4x8x1xf32, #tpu.memory_space<vmem>>, vector<4x8x1xf32>,
      %cst_142 = arith.constant 0.000000e+00 : f32
      %166 = vector.broadcast %cst_142 : f32 to vector<4x8x8xf32>
      %c0_143 = arith.constant 0 : index
      %c0_144 = arith.constant 0 : index
      %c0_145 = arith.constant 0 : index
      %167 = vector.load %arg11[%c0_143, %c0_144, %c0_145] : memref<4x8x8xf32, #tpu.memory_space<vmem>>, vector<4x8x8xf32>
      tpu.vector_store %arg11[%c0_143, %c0_144, %c0_145], %166 {strides = array<i32>} : memref<4x8x8xf32, #tpu.memory_space<vmem>>, vector<4x8x8xf32>,
    } else {
    }
    %c0 = arith.constant 0 : index
    %c0_1 = arith.constant 0 : index
    %c0_2 = arith.constant 0 : index
    %c0_3 = arith.constant 0 : index
    %3 = vector.load %arg3[%c0, %c0_1, %c0_2, %c0_3] : memref<1x4x8x8xbf16, #tpu.memory_space<vmem>>, vector<1x1x8x8xbf16>
    %4 = vector.shape_cast %3 : vector<1x1x8x8xbf16> to vector<8x8xbf16>
    %c0_4 = arith.constant 0 : index
    %c0_5 = arith.constant 0 : index
    %c0_6 = arith.constant 0 : index
    %c0_7 = arith.constant 0 : index
    %5 = vector.load %arg4[%c0_4, %c0_5, %c0_6, %c0_7] : memref<1x4x8x8xbf16, #tpu.memory_space<vmem>>, vector<1x1x8x8xbf16>
    %6 = vector.shape_cast %5 : vector<1x1x8x8xbf16> to vector<8x8xbf16>
    %c0_8 = arith.constant 0 : index
    %c0_9 = arith.constant 0 : index
    %c0_10 = arith.constant 0 : index
    %c0_11 = arith.constant 0 : index
    %7 = vector.load %arg5[%c0_8, %c0_9, %c0_10, %c0_11] : memref<1x4x8x8xbf16, #tpu.memory_space<vmem>>, vector<1x1x8x8xbf16>
    %8 = vector.shape_cast %7 : vector<1x1x8x8xbf16> to vector<8x8xbf16>
    %cst = arith.constant dense<0.000000e+00> : vector<8x8xf32>
    %9 = tpu.matmul %4, %6, %cst {dimension_numbers = #tpu.dot_dimension_numbers<[1], [1], [0], [0], [0, 0, 1, 0], [], []>} : vector<8x8xbf16>, vector<8x8xbf16>, vector<8x8xf32> -> vector<8x8xf32>
    %c0_12 = arith.constant 0 : index
    %c0_13 = arith.constant 0 : index
    %c0_14 = arith.constant 0 : index
    %10 = vector.load %arg9[%c0_12, %c0_13, %c0_14] : memref<4x8x1xf32, #tpu.memory_space<vmem>>, vector<1x8x1xf32>
    %11 = vector.shape_cast %10 : vector<1x8x1xf32> to vector<8x1xf32>
    %cst_15 = arith.constant dense<0xFF800000> : vector<8xf32>
    %12 = vector.multi_reduction <maximumf>, %9, %cst_15 [1] : vector<8x8xf32> to vector<8xf32>
    %13 = vector.shape_cast %12 : vector<8xf32> to vector<8x1xf32>
    %14 = arith.maximumf %11, %13 : vector<8x1xf32>
    %15 = arith.subf %11, %14 : vector<8x1xf32>
    %16 = math.exp %15 : vector<8x1xf32>
    %17 = vector.broadcast %14 : vector<8x1xf32> to vector<8x8xf32>
    %18 = arith.subf %9, %17 : vector<8x8xf32>
    %19 = math.exp %18 : vector<8x8xf32>
    %c0_16 = arith.constant 0 : index
    %c0_17 = arith.constant 0 : index
    %c0_18 = arith.constant 0 : index
    %20 = vector.load %arg10[%c0_16, %c0_17, %c0_18] : memref<4x8x1xf32, #tpu.memory_space<vmem>>, vector<1x8x1xf32>
    %21 = vector.shape_cast %20 : vector<1x8x1xf32> to vector<8x1xf32>
    %22 = arith.mulf %16, %21 : vector<8x1xf32>
    %cst_19 = arith.constant dense<0.000000e+00> : vector<8xf32>
    %23 = vector.multi_reduction <add>, %19, %cst_19 [1] : vector<8x8xf32> to vector<8xf32>
    %24 = vector.shape_cast %23 : vector<8xf32> to vector<8x1xf32>
    %25 = arith.addf %22, %24 : vector<8x1xf32>
    %c0_20 = arith.constant 0 : index
    %c0_21 = arith.constant 0 : index
    %c0_22 = arith.constant 0 : index
    %26 = vector.load %arg10[%c0_20, %c0_21, %c0_22] : memref<4x8x1xf32, #tpu.memory_space<vmem>>, vector<1x8x1xf32>
    %27 = vector.shape_cast %26 : vector<1x8x1xf32> to vector<8x1xf32>
    %28 = vector.shape_cast %25 : vector<8x1xf32> to vector<1x8x1xf32>
    tpu.vector_store %arg10[%c0_20, %c0_21, %c0_22], %28 {strides = array<i32>} : memref<4x8x1xf32, #tpu.memory_space<vmem>>, vector<1x8x1xf32>,
    %c0_23 = arith.constant 0 : index
    %c0_24 = arith.constant 0 : index
    %c0_25 = arith.constant 0 : index
    %29 = vector.load %arg11[%c0_23, %c0_24, %c0_25] : memref<4x8x8xf32, #tpu.memory_space<vmem>>, vector<1x8x8xf32>
    %30 = vector.shape_cast %29 : vector<1x8x8xf32> to vector<8x8xf32>
    %31 = vector.broadcast %16 : vector<8x1xf32> to vector<8x8xf32>
    %32 = arith.mulf %31, %30 : vector<8x8xf32>
    %33 = arith.truncf %19 : vector<8x8xf32> to vector<8x8xbf16>
    %cst_26 = arith.constant dense<0.000000e+00> : vector<8x8xf32>
    %34 = tpu.matmul %33, %8, %cst_26 {dimension_numbers = #tpu.dot_dimension_numbers<[1], [0], [0], [1], [0, 0, 1, 1], [], []>} : vector<8x8xbf16>, vector<8x8xbf16>, vector<8x8xf32> -> vector<8x8xf32>
    %35 = arith.addf %32, %34 : vector<8x8xf32>
    %c0_27 = arith.constant 0 : index
    %c0_28 = arith.constant 0 : index
    %c0_29 = arith.constant 0 : index
    %36 = vector.load %arg11[%c0_27, %c0_28, %c0_29] : memref<4x8x8xf32, #tpu.memory_space<vmem>>, vector<1x8x8xf32>
    %37 = vector.shape_cast %36 : vector<1x8x8xf32> to vector<8x8xf32>
    %38 = vector.shape_cast %35 : vector<8x8xf32> to vector<1x8x8xf32>
    tpu.vector_store %arg11[%c0_27, %c0_28, %c0_29], %38 {strides = array<i32>} : memref<4x8x8xf32, #tpu.memory_space<vmem>>, vector<1x8x8xf32>,
    %c0_30 = arith.constant 0 : index
    %c0_31 = arith.constant 0 : index
    %c0_32 = arith.constant 0 : index
    %39 = vector.load %arg9[%c0_30, %c0_31, %c0_32] : memref<4x8x1xf32, #tpu.memory_space<vmem>>, vector<1x8x1xf32>
    %40 = vector.shape_cast %39 : vector<1x8x1xf32> to vector<8x1xf32>
    %41 = vector.shape_cast %14 : vector<8x1xf32> to vector<1x8x1xf32>
    tpu.vector_store %arg9[%c0_30, %c0_31, %c0_32], %41 {strides = array<i32>} : memref<4x8x1xf32, #tpu.memory_space<vmem>>, vector<1x8x1xf32>,
    %c0_33 = arith.constant 0 : index
    %c1 = arith.constant 1 : index
    %c0_34 = arith.constant 0 : index
    %c0_35 = arith.constant 0 : index
    %42 = vector.load %arg3[%c0_33, %c1, %c0_34, %c0_35] : memref<1x4x8x8xbf16, #tpu.memory_space<vmem>>, vector<1x1x8x8xbf16>
    %43 = vector.shape_cast %42 : vector<1x1x8x8xbf16> to vector<8x8xbf16>
    %c0_36 = arith.constant 0 : index
    %c1_37 = arith.constant 1 : index
    %c0_38 = arith.constant 0 : index
    %c0_39 = arith.constant 0 : index
    %44 = vector.load %arg4[%c0_36, %c1_37, %c0_38, %c0_39] : memref<1x4x8x8xbf16, #tpu.memory_space<vmem>>, vector<1x1x8x8xbf16>
    %45 = vector.shape_cast %44 : vector<1x1x8x8xbf16> to vector<8x8xbf16>
    %c0_40 = arith.constant 0 : index
    %c1_41 = arith.constant 1 : index
    %c0_42 = arith.constant 0 : index
    %c0_43 = arith.constant 0 : index
    %46 = vector.load %arg5[%c0_40, %c1_41, %c0_42, %c0_43] : memref<1x4x8x8xbf16, #tpu.memory_space<vmem>>, vector<1x1x8x8xbf16>
    %47 = vector.shape_cast %46 : vector<1x1x8x8xbf16> to vector<8x8xbf16>
    %cst_44 = arith.constant dense<0.000000e+00> : vector<8x8xf32>
    %48 = tpu.matmul %43, %45, %cst_44 {dimension_numbers = #tpu.dot_dimension_numbers<[1], [1], [0], [0], [0, 0, 1, 0], [], []>} : vector<8x8xbf16>, vector<8x8xbf16>, vector<8x8xf32> -> vector<8x8xf32>
    %c1_45 = arith.constant 1 : index
    %c0_46 = arith.constant 0 : index
    %c0_47 = arith.constant 0 : index
    %49 = vector.load %arg9[%c1_45, %c0_46, %c0_47] : memref<4x8x1xf32, #tpu.memory_space<vmem>>, vector<1x8x1xf32>
    %50 = vector.shape_cast %49 : vector<1x8x1xf32> to vector<8x1xf32>
    %cst_48 = arith.constant dense<0xFF800000> : vector<8xf32>
    %51 = vector.multi_reduction <maximumf>, %48, %cst_48 [1] : vector<8x8xf32> to vector<8xf32>
    %52 = vector.shape_cast %51 : vector<8xf32> to vector<8x1xf32>
    %53 = arith.maximumf %50, %52 : vector<8x1xf32>
    %54 = arith.subf %50, %53 : vector<8x1xf32>
    %55 = math.exp %54 : vector<8x1xf32>
    %56 = vector.broadcast %53 : vector<8x1xf32> to vector<8x8xf32>
    %57 = arith.subf %48, %56 : vector<8x8xf32>
    %58 = math.exp %57 : vector<8x8xf32>
    %c1_49 = arith.constant 1 : index
    %c0_50 = arith.constant 0 : index
    %c0_51 = arith.constant 0 : index
    %59 = vector.load %arg10[%c1_49, %c0_50, %c0_51] : memref<4x8x1xf32, #tpu.memory_space<vmem>>, vector<1x8x1xf32>
    %60 = vector.shape_cast %59 : vector<1x8x1xf32> to vector<8x1xf32>
    %61 = arith.mulf %55, %60 : vector<8x1xf32>
    %cst_52 = arith.constant dense<0.000000e+00> : vector<8xf32>
    %62 = vector.multi_reduction <add>, %58, %cst_52 [1] : vector<8x8xf32> to vector<8xf32>
    %63 = vector.shape_cast %62 : vector<8xf32> to vector<8x1xf32>
    %64 = arith.addf %61, %63 : vector<8x1xf32>
    %c1_53 = arith.constant 1 : index
    %c0_54 = arith.constant 0 : index
    %c0_55 = arith.constant 0 : index
    %65 = vector.load %arg10[%c1_53, %c0_54, %c0_55] : memref<4x8x1xf32, #tpu.memory_space<vmem>>, vector<1x8x1xf32>
    %66 = vector.shape_cast %65 : vector<1x8x1xf32> to vector<8x1xf32>
    %67 = vector.shape_cast %64 : vector<8x1xf32> to vector<1x8x1xf32>
    tpu.vector_store %arg10[%c1_53, %c0_54, %c0_55], %67 {strides = array<i32>} : memref<4x8x1xf32, #tpu.memory_space<vmem>>, vector<1x8x1xf32>,
    %c1_56 = arith.constant 1 : index
    %c0_57 = arith.constant 0 : index
    %c0_58 = arith.constant 0 : index
    %68 = vector.load %arg11[%c1_56, %c0_57, %c0_58] : memref<4x8x8xf32, #tpu.memory_space<vmem>>, vector<1x8x8xf32>
    %69 = vector.shape_cast %68 : vector<1x8x8xf32> to vector<8x8xf32>
    %70 = vector.broadcast %55 : vector<8x1xf32> to vector<8x8xf32>
    %71 = arith.mulf %70, %69 : vector<8x8xf32>
    %72 = arith.truncf %58 : vector<8x8xf32> to vector<8x8xbf16>
    %cst_59 = arith.constant dense<0.000000e+00> : vector<8x8xf32>
    %73 = tpu.matmul %72, %47, %cst_59 {dimension_numbers = #tpu.dot_dimension_numbers<[1], [0], [0], [1], [0, 0, 1, 1], [], []>} : vector<8x8xbf16>, vector<8x8xbf16>, vector<8x8xf32> -> vector<8x8xf32>
    %74 = arith.addf %71, %73 : vector<8x8xf32>
    %c1_60 = arith.constant 1 : index
    %c0_61 = arith.constant 0 : index
    %c0_62 = arith.constant 0 : index
    %75 = vector.load %arg11[%c1_60, %c0_61, %c0_62] : memref<4x8x8xf32, #tpu.memory_space<vmem>>, vector<1x8x8xf32>
    %76 = vector.shape_cast %75 : vector<1x8x8xf32> to vector<8x8xf32>
    %77 = vector.shape_cast %74 : vector<8x8xf32> to vector<1x8x8xf32>
    tpu.vector_store %arg11[%c1_60, %c0_61, %c0_62], %77 {strides = array<i32>} : memref<4x8x8xf32, #tpu.memory_space<vmem>>, vector<1x8x8xf32>,
    %c1_63 = arith.constant 1 : index
    %c0_64 = arith.constant 0 : index
    %c0_65 = arith.constant 0 : index
    %78 = vector.load %arg9[%c1_63, %c0_64, %c0_65] : memref<4x8x1xf32, #tpu.memory_space<vmem>>, vector<1x8x1xf32>
    %79 = vector.shape_cast %78 : vector<1x8x1xf32> to vector<8x1xf32>
    %80 = vector.shape_cast %53 : vector<8x1xf32> to vector<1x8x1xf32>
    tpu.vector_store %arg9[%c1_63, %c0_64, %c0_65], %80 {strides = array<i32>} : memref<4x8x1xf32, #tpu.memory_space<vmem>>, vector<1x8x1xf32>,
    %c0_66 = arith.constant 0 : index
    %c2 = arith.constant 2 : index
    %c0_67 = arith.constant 0 : index
    %c0_68 = arith.constant 0 : index
    %81 = vector.load %arg3[%c0_66, %c2, %c0_67, %c0_68] : memref<1x4x8x8xbf16, #tpu.memory_space<vmem>>, vector<1x1x8x8xbf16>
    %82 = vector.shape_cast %81 : vector<1x1x8x8xbf16> to vector<8x8xbf16>
    %c0_69 = arith.constant 0 : index
    %c2_70 = arith.constant 2 : index
    %c0_71 = arith.constant 0 : index
    %c0_72 = arith.constant 0 : index
    %83 = vector.load %arg4[%c0_69, %c2_70, %c0_71, %c0_72] : memref<1x4x8x8xbf16, #tpu.memory_space<vmem>>, vector<1x1x8x8xbf16>
    %84 = vector.shape_cast %83 : vector<1x1x8x8xbf16> to vector<8x8xbf16>
    %c0_73 = arith.constant 0 : index
    %c2_74 = arith.constant 2 : index
    %c0_75 = arith.constant 0 : index
    %c0_76 = arith.constant 0 : index
    %85 = vector.load %arg5[%c0_73, %c2_74, %c0_75, %c0_76] : memref<1x4x8x8xbf16, #tpu.memory_space<vmem>>, vector<1x1x8x8xbf16>
    %86 = vector.shape_cast %85 : vector<1x1x8x8xbf16> to vector<8x8xbf16>
    %cst_77 = arith.constant dense<0.000000e+00> : vector<8x8xf32>
    %87 = tpu.matmul %82, %84, %cst_77 {dimension_numbers = #tpu.dot_dimension_numbers<[1], [1], [0], [0], [0, 0, 1, 0], [], []>} : vector<8x8xbf16>, vector<8x8xbf16>, vector<8x8xf32> -> vector<8x8xf32>
    %c2_78 = arith.constant 2 : index
    %c0_79 = arith.constant 0 : index
    %c0_80 = arith.constant 0 : index
    %88 = vector.load %arg9[%c2_78, %c0_79, %c0_80] : memref<4x8x1xf32, #tpu.memory_space<vmem>>, vector<1x8x1xf32>
    %89 = vector.shape_cast %88 : vector<1x8x1xf32> to vector<8x1xf32>
    %cst_81 = arith.constant dense<0xFF800000> : vector<8xf32>
    %90 = vector.multi_reduction <maximumf>, %87, %cst_81 [1] : vector<8x8xf32> to vector<8xf32>
    %91 = vector.shape_cast %90 : vector<8xf32> to vector<8x1xf32>
    %92 = arith.maximumf %89, %91 : vector<8x1xf32>
    %93 = arith.subf %89, %92 : vector<8x1xf32>
    %94 = math.exp %93 : vector<8x1xf32>
    %95 = vector.broadcast %92 : vector<8x1xf32> to vector<8x8xf32>
    %96 = arith.subf %87, %95 : vector<8x8xf32>
    %97 = math.exp %96 : vector<8x8xf32>
    %c2_82 = arith.constant 2 : index
    %c0_83 = arith.constant 0 : index
    %c0_84 = arith.constant 0 : index
    %98 = vector.load %arg10[%c2_82, %c0_83, %c0_84] : memref<4x8x1xf32, #tpu.memory_space<vmem>>, vector<1x8x1xf32>
    %99 = vector.shape_cast %98 : vector<1x8x1xf32> to vector<8x1xf32>
    %100 = arith.mulf %94, %99 : vector<8x1xf32>
    %cst_85 = arith.constant dense<0.000000e+00> : vector<8xf32>
    %101 = vector.multi_reduction <add>, %97, %cst_85 [1] : vector<8x8xf32> to vector<8xf32>
    %102 = vector.shape_cast %101 : vector<8xf32> to vector<8x1xf32>
    %103 = arith.addf %100, %102 : vector<8x1xf32>
    %c2_86 = arith.constant 2 : index
    %c0_87 = arith.constant 0 : index
    %c0_88 = arith.constant 0 : index
    %104 = vector.load %arg10[%c2_86, %c0_87, %c0_88] : memref<4x8x1xf32, #tpu.memory_space<vmem>>, vector<1x8x1xf32>
    %105 = vector.shape_cast %104 : vector<1x8x1xf32> to vector<8x1xf32>
    %106 = vector.shape_cast %103 : vector<8x1xf32> to vector<1x8x1xf32>
    tpu.vector_store %arg10[%c2_86, %c0_87, %c0_88], %106 {strides = array<i32>} : memref<4x8x1xf32, #tpu.memory_space<vmem>>, vector<1x8x1xf32>,
    %c2_89 = arith.constant 2 : index
    %c0_90 = arith.constant 0 : index
    %c0_91 = arith.constant 0 : index
    %107 = vector.load %arg11[%c2_89, %c0_90, %c0_91] : memref<4x8x8xf32, #tpu.memory_space<vmem>>, vector<1x8x8xf32>
    %108 = vector.shape_cast %107 : vector<1x8x8xf32> to vector<8x8xf32>
    %109 = vector.broadcast %94 : vector<8x1xf32> to vector<8x8xf32>
    %110 = arith.mulf %109, %108 : vector<8x8xf32>
    %111 = arith.truncf %97 : vector<8x8xf32> to vector<8x8xbf16>
    %cst_92 = arith.constant dense<0.000000e+00> : vector<8x8xf32>
    %112 = tpu.matmul %111, %86, %cst_92 {dimension_numbers = #tpu.dot_dimension_numbers<[1], [0], [0], [1], [0, 0, 1, 1], [], []>} : vector<8x8xbf16>, vector<8x8xbf16>, vector<8x8xf32> -> vector<8x8xf32>
    %113 = arith.addf %110, %112 : vector<8x8xf32>
    %c2_93 = arith.constant 2 : index
    %c0_94 = arith.constant 0 : index
    %c0_95 = arith.constant 0 : index
    %114 = vector.load %arg11[%c2_93, %c0_94, %c0_95] : memref<4x8x8xf32, #tpu.memory_space<vmem>>, vector<1x8x8xf32>
    %115 = vector.shape_cast %114 : vector<1x8x8xf32> to vector<8x8xf32>
    %116 = vector.shape_cast %113 : vector<8x8xf32> to vector<1x8x8xf32>
    tpu.vector_store %arg11[%c2_93, %c0_94, %c0_95], %116 {strides = array<i32>} : memref<4x8x8xf32, #tpu.memory_space<vmem>>, vector<1x8x8xf32>,
    %c2_96 = arith.constant 2 : index
    %c0_97 = arith.constant 0 : index
    %c0_98 = arith.constant 0 : index
    %117 = vector.load %arg9[%c2_96, %c0_97, %c0_98] : memref<4x8x1xf32, #tpu.memory_space<vmem>>, vector<1x8x1xf32>
    %118 = vector.shape_cast %117 : vector<1x8x1xf32> to vector<8x1xf32>
    %119 = vector.shape_cast %92 : vector<8x1xf32> to vector<1x8x1xf32>
    tpu.vector_store %arg9[%c2_96, %c0_97, %c0_98], %119 {strides = array<i32>} : memref<4x8x1xf32, #tpu.memory_space<vmem>>, vector<1x8x1xf32>,
    %c0_99 = arith.constant 0 : index
    %c3 = arith.constant 3 : index
    %c0_100 = arith.constant 0 : index
    %c0_101 = arith.constant 0 : index
    %120 = vector.load %arg3[%c0_99, %c3, %c0_100, %c0_101] : memref<1x4x8x8xbf16, #tpu.memory_space<vmem>>, vector<1x1x8x8xbf16>
    %121 = vector.shape_cast %120 : vector<1x1x8x8xbf16> to vector<8x8xbf16>
    %c0_102 = arith.constant 0 : index
    %c3_103 = arith.constant 3 : index
    %c0_104 = arith.constant 0 : index
    %c0_105 = arith.constant 0 : index
    %122 = vector.load %arg4[%c0_102, %c3_103, %c0_104, %c0_105] : memref<1x4x8x8xbf16, #tpu.memory_space<vmem>>, vector<1x1x8x8xbf16>
    %123 = vector.shape_cast %122 : vector<1x1x8x8xbf16> to vector<8x8xbf16>
    %c0_106 = arith.constant 0 : index
    %c3_107 = arith.constant 3 : index
    %c0_108 = arith.constant 0 : index
    %c0_109 = arith.constant 0 : index
    %124 = vector.load %arg5[%c0_106, %c3_107, %c0_108, %c0_109] : memref<1x4x8x8xbf16, #tpu.memory_space<vmem>>, vector<1x1x8x8xbf16>
    %125 = vector.shape_cast %124 : vector<1x1x8x8xbf16> to vector<8x8xbf16>
    %cst_110 = arith.constant dense<0.000000e+00> : vector<8x8xf32>
    %126 = tpu.matmul %121, %123, %cst_110 {dimension_numbers = #tpu.dot_dimension_numbers<[1], [1], [0], [0], [0, 0, 1, 0], [], []>} : vector<8x8xbf16>, vector<8x8xbf16>, vector<8x8xf32> -> vector<8x8xf32>
    %c3_111 = arith.constant 3 : index
    %c0_112 = arith.constant 0 : index
    %c0_113 = arith.constant 0 : index
    %127 = vector.load %arg9[%c3_111, %c0_112, %c0_113] : memref<4x8x1xf32, #tpu.memory_space<vmem>>, vector<1x8x1xf32>
    %128 = vector.shape_cast %127 : vector<1x8x1xf32> to vector<8x1xf32>
    %cst_114 = arith.constant dense<0xFF800000> : vector<8xf32>
    %129 = vector.multi_reduction <maximumf>, %126, %cst_114 [1] : vector<8x8xf32> to vector<8xf32>
    %130 = vector.shape_cast %129 : vector<8xf32> to vector<8x1xf32>
    %131 = arith.maximumf %128, %130 : vector<8x1xf32>
    %132 = arith.subf %128, %131 : vector<8x1xf32>
    %133 = math.exp %132 : vector<8x1xf32>
    %134 = vector.broadcast %131 : vector<8x1xf32> to vector<8x8xf32>
    %135 = arith.subf %126, %134 : vector<8x8xf32>
    %136 = math.exp %135 : vector<8x8xf32>
    %c3_115 = arith.constant 3 : index
    %c0_116 = arith.constant 0 : index
    %c0_117 = arith.constant 0 : index
    %137 = vector.load %arg10[%c3_115, %c0_116, %c0_117] : memref<4x8x1xf32, #tpu.memory_space<vmem>>, vector<1x8x1xf32>
    %138 = vector.shape_cast %137 : vector<1x8x1xf32> to vector<8x1xf32>
    %139 = arith.mulf %133, %138 : vector<8x1xf32>
    %cst_118 = arith.constant dense<0.000000e+00> : vector<8xf32>
    %140 = vector.multi_reduction <add>, %136, %cst_118 [1] : vector<8x8xf32> to vector<8xf32>
    %141 = vector.shape_cast %140 : vector<8xf32> to vector<8x1xf32>
    %142 = arith.addf %139, %141 : vector<8x1xf32>
    %c3_119 = arith.constant 3 : index
    %c0_120 = arith.constant 0 : index
    %c0_121 = arith.constant 0 : index
    %143 = vector.load %arg10[%c3_119, %c0_120, %c0_121] : memref<4x8x1xf32, #tpu.memory_space<vmem>>, vector<1x8x1xf32>
    %144 = vector.shape_cast %143 : vector<1x8x1xf32> to vector<8x1xf32>
    %145 = vector.shape_cast %142 : vector<8x1xf32> to vector<1x8x1xf32>
    tpu.vector_store %arg10[%c3_119, %c0_120, %c0_121], %145 {strides = array<i32>} : memref<4x8x1xf32, #tpu.memory_space<vmem>>, vector<1x8x1xf32>,
    %c3_122 = arith.constant 3 : index
    %c0_123 = arith.constant 0 : index
    %c0_124 = arith.constant 0 : index
    %146 = vector.load %arg11[%c3_122, %c0_123, %c0_124] : memref<4x8x8xf32, #tpu.memory_space<vmem>>, vector<1x8x8xf32>
    %147 = vector.shape_cast %146 : vector<1x8x8xf32> to vector<8x8xf32>
    %148 = vector.broadcast %133 : vector<8x1xf32> to vector<8x8xf32>
    %149 = arith.mulf %148, %147 : vector<8x8xf32>
    %150 = arith.truncf %136 : vector<8x8xf32> to vector<8x8xbf16>
    %cst_125 = arith.constant dense<0.000000e+00> : vector<8x8xf32>
    %151 = tpu.matmul %150, %125, %cst_125 {dimension_numbers = #tpu.dot_dimension_numbers<[1], [0], [0], [1], [0, 0, 1, 1], [], []>} : vector<8x8xbf16>, vector<8x8xbf16>, vector<8x8xf32> -> vector<8x8xf32>
    %152 = arith.addf %149, %151 : vector<8x8xf32>
    %c3_126 = arith.constant 3 : index
    %c0_127 = arith.constant 0 : index
    %c0_128 = arith.constant 0 : index
    %153 = vector.load %arg11[%c3_126, %c0_127, %c0_128] : memref<4x8x8xf32, #tpu.memory_space<vmem>>, vector<1x8x8xf32>
    %154 = vector.shape_cast %153 : vector<1x8x8xf32> to vector<8x8xf32>
    %155 = vector.shape_cast %152 : vector<8x8xf32> to vector<1x8x8xf32>
    tpu.vector_store %arg11[%c3_126, %c0_127, %c0_128], %155 {strides = array<i32>} : memref<4x8x8xf32, #tpu.memory_space<vmem>>, vector<1x8x8xf32>,
    %c3_129 = arith.constant 3 : index
    %c0_130 = arith.constant 0 : index
    %c0_131 = arith.constant 0 : index
    %156 = vector.load %arg9[%c3_129, %c0_130, %c0_131] : memref<4x8x1xf32, #tpu.memory_space<vmem>>, vector<1x8x1xf32>
    %157 = vector.shape_cast %156 : vector<1x8x1xf32> to vector<8x1xf32>
    %158 = vector.shape_cast %131 : vector<8x1xf32> to vector<1x8x1xf32>
    tpu.vector_store %arg9[%c3_129, %c0_130, %c0_131], %158 {strides = array<i32>} : memref<4x8x1xf32, #tpu.memory_space<vmem>>, vector<1x8x1xf32>,
    %c0_i32_132 = arith.constant 0 : i32
    %159 = arith.cmpi eq, %arg2, %c0_i32_132 : i32
    %160 = arith.extui %159 : i1 to i32
    %c0_i32_133 = arith.constant 0 : i32
    %161 = arith.cmpi ne, %160, %c0_i32_133 : i32
    scf.if %161 {
      %c0_134 = arith.constant 0 : index
      %c0_135 = arith.constant 0 : index
      %c0_136 = arith.constant 0 : index
      %162 = vector.load %arg10[%c0_134, %c0_135, %c0_136] : memref<4x8x1xf32, #tpu.memory_space<vmem>>, vector<1x8x1xf32>
      %163 = vector.shape_cast %162 : vector<1x8x1xf32> to vector<8x1xf32>
      %164 = tpu.reciprocal %163 {approx = true} : vector<8x1xf32> -> vector<8x1xf32>
      %c0_137 = arith.constant 0 : index
      %c0_138 = arith.constant 0 : index
      %c0_139 = arith.constant 0 : index
      %165 = vector.load %arg11[%c0_137, %c0_138, %c0_139] : memref<4x8x8xf32, #tpu.memory_space<vmem>>, vector<1x8x8xf32>
      %166 = vector.shape_cast %165 : vector<1x8x8xf32> to vector<8x8xf32>
      %167 = vector.broadcast %164 : vector<8x1xf32> to vector<8x8xf32>
      %168 = arith.mulf %166, %167 : vector<8x8xf32>
      %169 = arith.truncf %168 : vector<8x8xf32> to vector<8x8xbf16>
      %c0_140 = arith.constant 0 : index
      %c0_141 = arith.constant 0 : index
      %170 = vector.load %arg12[%c0_140, %c0_141] : memref<8x32xbf16, #tpu.memory_space<vmem>>, vector<8x8xbf16>
      tpu.vector_store %arg12[%c0_140, %c0_141], %169 {strides = array<i32>} : memref<8x32xbf16, #tpu.memory_space<vmem>>, vector<8x8xbf16>,
      %c1_142 = arith.constant 1 : index
      %c0_143 = arith.constant 0 : index
      %c0_144 = arith.constant 0 : index
      %171 = vector.load %arg10[%c1_142, %c0_143, %c0_144] : memref<4x8x1xf32, #tpu.memory_space<vmem>>, vector<1x8x1xf32>
      %172 = vector.shape_cast %171 : vector<1x8x1xf32> to vector<8x1xf32>
      %173 = tpu.reciprocal %172 {approx = true} : vector<8x1xf32> -> vector<8x1xf32>
      %c1_145 = arith.constant 1 : index
      %c0_146 = arith.constant 0 : index
      %c0_147 = arith.constant 0 : index
      %174 = vector.load %arg11[%c1_145, %c0_146, %c0_147] : memref<4x8x8xf32, #tpu.memory_space<vmem>>, vector<1x8x8xf32>
      %175 = vector.shape_cast %174 : vector<1x8x8xf32> to vector<8x8xf32>
      %176 = vector.broadcast %173 : vector<8x1xf32> to vector<8x8xf32>
      %177 = arith.mulf %175, %176 : vector<8x8xf32>
      %178 = arith.truncf %177 : vector<8x8xf32> to vector<8x8xbf16>
      %c0_148 = arith.constant 0 : index
      %c8 = arith.constant 8 : index
      %179 = vector.load %arg12[%c0_148, %c8] : memref<8x32xbf16, #tpu.memory_space<vmem>>, vector<8x8xbf16>
      tpu.vector_store %arg12[%c0_148, %c8], %178 {strides = array<i32>} : memref<8x32xbf16, #tpu.memory_space<vmem>>, vector<8x8xbf16>,
      %c2_149 = arith.constant 2 : index
      %c0_150 = arith.constant 0 : index
      %c0_151 = arith.constant 0 : index
      %180 = vector.load %arg10[%c2_149, %c0_150, %c0_151] : memref<4x8x1xf32, #tpu.memory_space<vmem>>, vector<1x8x1xf32>
      %181 = vector.shape_cast %180 : vector<1x8x1xf32> to vector<8x1xf32>
      %182 = tpu.reciprocal %181 {approx = true} : vector<8x1xf32> -> vector<8x1xf32>
      %c2_152 = arith.constant 2 : index
      %c0_153 = arith.constant 0 : index
      %c0_154 = arith.constant 0 : index
      %183 = vector.load %arg11[%c2_152, %c0_153, %c0_154] : memref<4x8x8xf32, #tpu.memory_space<vmem>>, vector<1x8x8xf32>
      %184 = vector.shape_cast %183 : vector<1x8x8xf32> to vector<8x8xf32>
      %185 = vector.broadcast %182 : vector<8x1xf32> to vector<8x8xf32>
      %186 = arith.mulf %184, %185 : vector<8x8xf32>
      %187 = arith.truncf %186 : vector<8x8xf32> to vector<8x8xbf16>
      %c0_155 = arith.constant 0 : index
      %c16 = arith.constant 16 : index
      %188 = vector.load %arg12[%c0_155, %c16] : memref<8x32xbf16, #tpu.memory_space<vmem>>, vector<8x8xbf16>
      tpu.vector_store %arg12[%c0_155, %c16], %187 {strides = array<i32>} : memref<8x32xbf16, #tpu.memory_space<vmem>>, vector<8x8xbf16>,
      %c3_156 = arith.constant 3 : index
      %c0_157 = arith.constant 0 : index
      %c0_158 = arith.constant 0 : index
      %189 = vector.load %arg10[%c3_156, %c0_157, %c0_158] : memref<4x8x1xf32, #tpu.memory_space<vmem>>, vector<1x8x1xf32>
      %190 = vector.shape_cast %189 : vector<1x8x1xf32> to vector<8x1xf32>
      %191 = tpu.reciprocal %190 {approx = true} : vector<8x1xf32> -> vector<8x1xf32>
      %c3_159 = arith.constant 3 : index
      %c0_160 = arith.constant 0 : index
      %c0_161 = arith.constant 0 : index
      %192 = vector.load %arg11[%c3_159, %c0_160, %c0_161] : memref<4x8x8xf32, #tpu.memory_space<vmem>>, vector<1x8x8xf32>
      %193 = vector.shape_cast %192 : vector<1x8x8xf32> to vector<8x8xf32>
      %194 = vector.broadcast %191 : vector<8x1xf32> to vector<8x8xf32>
      %195 = arith.mulf %193, %194 : vector<8x8xf32>
      %196 = arith.truncf %195 : vector<8x8xf32> to vector<8x8xbf16>
      %c0_162 = arith.constant 0 : index
      %c24 = arith.constant 24 : index
      %197 = vector.load %arg12[%c0_162, %c24] : memref<8x32xbf16, #tpu.memory_space<vmem>>, vector<8x8xbf16>
      tpu.vector_store %arg12[%c0_162, %c24], %196 {strides = array<i32>} : memref<8x32xbf16, #tpu.memory_space<vmem>>, vector<8x8xbf16>,
      %c0_163 = arith.constant 0 : index
      %c0_164 = arith.constant 0 : index
      %198 = vector.load %arg12[%c0_163, %c0_164] : memref<8x32xbf16, #tpu.memory_space<vmem>>, vector<8x32xbf16>
      %c0_165 = arith.constant 0 : index
      %c0_166 = arith.constant 0 : index
      %199 = vector.load %arg6[%c0_165, %c0_166] : memref<32x128xbf16, #tpu.memory_space<vmem>>, vector<32x128xbf16>
      %cst_167 = arith.constant dense<0.000000e+00> : vector<8x128xf32>
      %200 = tpu.matmul %198, %199, %cst_167 {dimension_numbers = #tpu.dot_dimension_numbers<[1], [0], [0], [1], [0, 0, 1, 1], [], []>} : vector<8x32xbf16>, vector<32x128xbf16>, vector<8x128xf32> -> vector<8x128xf32>
      %c0_168 = arith.constant 0 : index
      %c0_169 = arith.constant 0 : index
      %201 = vector.load %arg7[%c0_168, %c0_169] : memref<1x128xf32, #tpu.memory_space<vmem>>, vector<1x128xf32>
      %202 = vector.broadcast %201 : vector<1x128xf32> to vector<8x128xf32>
      %203 = arith.addf %200, %202 : vector<8x128xf32>
      %c0_170 = arith.constant 0 : index
      %c0_171 = arith.constant 0 : index
      %c0_172 = arith.constant 0 : index
      %204 = vector.load %arg8[%c0_170, %c0_171, %c0_172] : memref<1x8x128xf32, #tpu.memory_space<vmem>>, vector<1x8x128xf32>
      %205 = vector.shape_cast %204 : vector<1x8x128xf32> to vector<8x128xf32>
      %206 = vector.shape_cast %203 : vector<8x128xf32> to vector<1x8x128xf32>
      tpu.vector_store %arg8[%c0_170, %c0_171, %c0_172], %206 {strides = array<i32>} : memref<1x8x128xf32, #tpu.memory_space<vmem>>, vector<1x8x128xf32>,
    } else {
    }
    return
  }
  func.func @transform_0(%arg0: i32, %arg1: i32, %arg2: i32) -> (i32, i32, i32, i32) {
    %c0_i32 = arith.constant 0 : i32
    %c0_i32_0 = arith.constant 0 : i32
    %c0_i32_1 = arith.constant 0 : i32
    return %arg0, %c0_i32, %arg1, %c0_i32_0 : i32, i32, i32, i32
  }
  func.func @transform_1(%arg0: i32, %arg1: i32, %arg2: i32) -> (i32, i32, i32, i32) {
    %c0_i32 = arith.constant 0 : i32
    %c0_i32_0 = arith.constant 0 : i32
    %c0_i32_1 = arith.constant 0 : i32
    return %arg0, %c0_i32, %arg2, %c0_i32_0 : i32, i32, i32, i32
  }
  func.func @transform_2(%arg0: i32, %arg1: i32, %arg2: i32) -> (i32, i32, i32, i32) {
    %c0_i32 = arith.constant 0 : i32
    %c0_i32_0 = arith.constant 0 : i32
    %c0_i32_1 = arith.constant 0 : i32
    return %arg0, %c0_i32, %arg2, %c0_i32_0 : i32, i32, i32, i32
  }
  func.func @transform_3(%arg0: i32, %arg1: i32, %arg2: i32) -> (i32, i32) {
    %c0_i32 = arith.constant 0 : i32
    %c0_i32_0 = arith.constant 0 : i32
    %c0_i32_1 = arith.constant 0 : i32
    return %c0_i32, %c0_i32_0 : i32, i32
  }
  func.func @transform_4(%arg0: i32, %arg1: i32, %arg2: i32) -> (i32, i32) {
    %c0_i32 = arith.constant 0 : i32
    %c0_i32_0 = arith.constant 0 : i32
    %c0_i32_1 = arith.constant 0 : i32
    return %c0_i32, %c0_i32_0 : i32, i32
  }
  func.func @transform_5(%arg0: i32, %arg1: i32, %arg2: i32) -> (i32, i32, i32) {
    %c0_i32 = arith.constant 0 : i32
    %c0_i32_0 = arith.constant 0 : i32
    return %arg0, %arg1, %c0_i32 : i32, i32, i32
  }
}

</mosaic_0001>

<bundles_post_ra>
// kernel: tpu_custom_call.1
= control target key start
LH: loop header
LB: loop body
LE: loop exit
PB: predicated region body
PF: predicated region fallthrough
CT: control target
= control target key end

     0   :  { %s2069_s0 = inlined_call_operand.hbm [shape: bf16[2,4,8,8], index: 0, kind: input, shape index: {}]   ;;  %s2070_s1 = inlined_call_operand.hbm [shape: bf16[2,4,8,8], index: 1, kind: input, shape index: {}]   ;;  %s2071_s2 = inlined_call_operand.hbm [shape: bf16[2,4,8,8], index: 2, kind: input, shape index: {}]   ;;  %s2072_s3 = inlined_call_operand.hbm [shape: bf16[32,128], index: 3, kind: input, shape index: {}]   ;;  %s2073_s4 = inlined_call_operand.vmem [shape: f32[1,128], index: 4, kind: input, shape index: {}]   ;;  %s2074_s5 = inlined_call_operand.hbm [shape: f32[2,8,128], index: 5, kind: output, shape index: {}]  }
   0x1   :  { %2084 = sst [smem:[#allocation22_spill]] %s2069_s0 }
   0x2   :  { %2085 = sst [smem:[#allocation23_spill]] %s2070_s1 }
   0x3   :  { %10 = vsyncpa [#allocation7], 0 }
   0x4   :  { %12 = vsyncpa [#allocation7 + $0x1], 0 }
   0x5   :  { %13 = vsyncpa [#allocation10], 0 }
   0x6   :  { %15 = vsyncpa [#allocation10 + $0x1], 0 }
   0x7   :  { %16 = vsyncpa [#allocation13], 0 }
   0x8   :  { %17 = vsyncpa [#allocation8], 0 }
   0x9   :  { %19 = vsyncpa [#allocation8 + $0x1], 0  ;;  %s1708_s18 = smov 0   ;;  %s1710_s19 = smov 0  }
   0xa   :  { %s1712_s20 = smov 0   ;;  %s1714_s21 = smov 0  }
   0xb   :  { %s1716_s22 = smov 0   ;;  %s1718_s23 = smov 0  }
   0xc LB: > { %2086 = sst [smem:[#allocation19_spill]] %s1658_s22  ;;  %s44_s24 = sadd.s32 1, %s1658_s22  ;;  %s1662_s23 = sphi %s1718_s23, %s25_s23   ;;  %s1658_s22 = sphi %s1716_s22, %s2107_s22   ;;  %s1654_s21 = sphi %s1714_s21, %s2106_s21   ;;  %s1650_s20 = sphi %s1712_s20, %s2110_s20   ;;  %s1646_s19 = sphi %s1710_s19, %s2109_s19   ;;  %s1642_s18 = sphi %s1708_s18, %s2108_s18  }
   0xd   : > { %s53_s25 = sadd.s32 1, %s1650_s20  ;;  %p46_p0 = scmp.ge.s32.totalorder %s44_s24, 2 }
   0xe   : > { %p60_p1 = scmp.ne.s32.totalorder %s1650_s20, %s1646_s19  ;;  %p61_p2 = scmp.eq.s32.totalorder %s1662_s23, 0 }
   0xf   : > { %s2112_s24 = smov (%p46_p0, %s44_s24), 0  ;;  %p1375_p6 = scmp.lt.s32.totalorder %s1662_s23, 2 }
  0x10   : > { %2087 = sst [smem:[#allocation20_spill]] %s2112_s24  ;;  %p62_p3 = por %p61_p2, %p60_p1 }
  0x11   : > { %s48_s26 = ssub.s32 %s1658_s22, %s2112_s24  ;;  %s2079_s27 = sand.u32 1, %s1650_s20  }
  0x12   : > { %p51_p5 = scmp.eq.s32.totalorder %s48_s26, 0  ;;  %s1754_s28 = sshll.u32 %s1658_s22, 8 }
  0x13   : > { %s1761_s30 = sshll.u32 %s2079_s27, 4  ;;  %p1763_p7 = pnand %p1375_p6, %p62_p3 }
  0x14   : > { %s1757_s29 = scalar_select %p51_p5, %s1650_s20, %s53_s25  }
  0x15   : > { %s254_s7 = sand.u32 1, %s1662_s23   ;;  %s2090_s1 = sld [smem:[#allocation23_spill]] }
  0x16   : > { %2088 = sst [smem:[#allocation21_spill]] %s1757_s29  ;;  %s258_s11 = scalar_lea.vmem [#allocation9], %s1761_s30 }
  0x17   : > { %s266_s12 = sshll.u32 %s258_s11, 4  ;;  %s1773_s13 = scalar_lea.sflag [#allocation10], %s254_s7  ;;  %s267_s12 = int_to_ptr.vmem [resolvable:$true] %s266_s12 }
  0x18   : > { %p2083_p8 = pneg %p1763_p7  ;;  %s1477_s14 = scalar_lea.vmem %s267_s12, 256 }
  0x19   : > { %p1478_p9 = scmp.ne.s32.totalorder %s267_s12, %s1477_s14  ;;  %s1664_s15 = smov [#allocation9]  }
  0x1a   : > { %s1482_s16 = sshll.u32 %s1664_s15, 4  ;;  %s1483_s16 = int_to_ptr.vmem [resolvable:$false] %s1482_s16 }
  0x1b   : > { %s265_s10 = scalar_lea.hbm %s2090_s1, %s1754_s28  ;;  %p1480_p10 = pnand %p1478_p9, %p2083_p8 }
  0x1c   : > { %s1484_s17 = scalar_lea.vmem %s1483_s16, 512  ;;  %p1485_p12 = scmp.lt.s32.totalorder %s267_s12, %s1483_s16 }
  0x1d   : > { %p1481_p11 = pneg %p1480_p10  ;;  %p1486_p13 = scmp.lt.s32.totalorder %s1484_s17, %s1477_s14 }
  0x1f   : > { %p1487_p0 = por %p1486_p13, %p1485_p12 }
  0x21   : > { %p1488_p2 = pnand %p1487_p0, %p1481_p11 }
  0x23   : > { %1491 = shalt.err (!%p1488_p2)
}
  0x24   : > { %s2075_s25 = smov 64   ;;  %s2077_s26 = smov 4  }
  0x25   : > { %1366 = dma.hbm_to_vmem [thread:$0]  (!%p1763_p7), %s265_s10, 256, %s267_s12, %s1773_s13, %s2075_s25, %s2075_s25, %s2077_s26  }
  0x26   : > { %s1787_s7 = sadd.s32 4294967295, %s1662_s23   ;;  %s1216_s8 = sadd.s32 4294967294, %s1662_s23  }
  0x27   : > { %p66_p3 = scmp.ne.s32.totalorder %s1646_s19, %s1642_s18  ;;  %p2082_p5 = scmp.eq.s32.totalorder %s1787_s7, 0 }
  0x28   : > { %p190_p6 = scmp.eq.s32.totalorder %s1787_s7, 1  ;;  %p196_p9 = scmp.eq.s32.totalorder %s1216_s8, 1 }
  0x29   : > { %p1217_p10 = scmp.ge.s32.totalorder %s1662_s23, 1  ;;  %p1797_p11 = por %p2082_p5, %p66_p3 }
  0x2a   : > { %p1804_p12 = por %p190_p6, %p60_p1  ;;  %p1808_p13 = por %p196_p9, %p66_p3 }
  0x2b   : > { %p203_p0 = scmp.lt.s32.totalorder %s1662_s23, 3  ;;  %s1667_s14 = smov [#allocation12]  }
  0x2c   : > { %s2093_s11 = scalar_select %p1808_p13, 1, 0 }
  0x2d   : > { %p1813_p2 = pnand %p1217_p10, %p203_p0  ;;  %s215_s15 = sshll.u32 %s1667_s14, 4  ;;  %s1817_s15 = int_to_ptr.vmem [resolvable:$true] %s215_s15 }
  0x2e   : > { %s2095_s0 = sld [smem:[#allocation22_spill]]  ;;  %s236_s25 = scalar_lea.vmem [#allocation6], %s1761_s30 }
  0x2f   : > { %p1356_p1 = pneg %p1813_p2  ;;  %s244_s26 = sshll.u32 %s236_s25, 4  ;;  %s245_s26 = int_to_ptr.vmem [resolvable:$true] %s244_s26 }
  0x30   : > { %s2097_s1 = sand.u32 1, %s1650_s20   ;;  %s1505_s22 = scalar_lea.vmem %s245_s26, 256 }
  0x31   : > { %p1828_p3 = pnand %p1356_p1, %p2082_p5  ;;  %s233_s24 = scalar_lea.sflag [#allocation7], %s2097_s1 }
  0x32   : > { %p1506_p6 = scmp.ne.s32.totalorder %s245_s26, %s1505_s22  ;;  %s1668_s14 = smov [#allocation6]  }
  0x33   : > { %s1510_s29 = sshll.u32 %s1668_s14, 4  ;;  %s1511_s29 = int_to_ptr.vmem [resolvable:$false] %s1510_s29 }
  0x34   : > { %s243_s8 = scalar_lea.hbm %s2095_s0, %s1754_s28  ;;  %p1508_p9 = pnand %p1506_p6, %p2083_p8 }
  0x35   : > { %s1512_s16 = scalar_lea.vmem %s1511_s29, 512  ;;  %p1513_p0 = scmp.lt.s32.totalorder %s245_s26, %s1511_s29 }
  0x36   : > { %p1509_p10 = pneg %p1508_p9  ;;  %p1514_p4 = scmp.lt.s32.totalorder %s1512_s16, %s1505_s22 }
  0x38   : > { %p1515_p13 = por %p1514_p4, %p1513_p0 }
  0x3a   : > { %p1516_p1 = pnand %p1515_p13, %p1509_p10 }
  0x3c   : > { %1519 = shalt.err (!%p1516_p1)
}
  0x3d   : > { %s2098_s25 = smov 4   ;;  %s2099_s17 = smov 64  }
  0x3e   : > { %1363 = dma.hbm_to_vmem [thread:$0]  (!%p1763_p7), %s243_s8, 256, %s245_s26, %s233_s24, %s2099_s17, %s2099_s17, %s2098_s25  }
  0x3f   : > { %p1522_p6 = pneg %p1828_p3  ;;  %s1531_s1 = scalar_lea.vmem %s1817_s15, 256 }
  0x40   : > { %p1532_p9 = scmp.ne.s32.totalorder %s1817_s15, %s1531_s1  ;;  %p1539_p4 = scmp.lt.s32.totalorder %s1817_s15, %s1817_s15 }
  0x41   : > { %p1540_p13 = scmp.lt.s32.totalorder %s1531_s1, %s1531_s1 }
  0x42   : > { %p1534_p5 = pnand %p1532_p9, %p1522_p6 }
  0x43   : > { %p1541_p10 = por %p1540_p13, %p1539_p4 }
  0x44   : > { %p1535_p8 = pneg %p1534_p5 }
  0x46   : > { %p1542_p0 = pnand %p1541_p10, %p1535_p8 }
  0x48   : > { %1545 = shalt.err (!%p1542_p0)
}
  0x49   : > { %1359 = dma.hbm_to_vmem [thread:$0]  (!%p1828_p3), %s2072_s3, 256, %s1817_s15, [#allocation13], %s2099_s17, %s2099_s17, %s2098_s25  }
  0x4a   : > { %s287_s8 = scalar_lea.hbm %s2071_s2, %s1754_s28  ;;  %s280_s14 = scalar_lea.vmem [#allocation11], %s1761_s30 }
  0x4b   : > { %s288_s16 = sshll.u32 %s280_s14, 4  ;;  %p2100_p5 = pneg %p1763_p7  ;;  %s289_s16 = int_to_ptr.vmem [resolvable:$true] %s288_s16 }
  0x4c   : > { %s1559_s1 = scalar_lea.vmem %s289_s16, 256  ;;  %s1669_s27 = smov [#allocation11]  }
  0x4d   : > { %p1560_p8 = scmp.ne.s32.totalorder %s289_s16, %s1559_s1  ;;  %s1564_s0 = sshll.u32 %s1669_s27, 4  ;;  %s1565_s0 = int_to_ptr.vmem [resolvable:$false] %s1564_s0 }
  0x4e   : > { %s1566_s22 = scalar_lea.vmem %s1565_s0, 512  ;;  %p1567_p9 = scmp.lt.s32.totalorder %s289_s16, %s1565_s0 }
  0x4f   : > { %p1562_p1 = pnand %p1560_p8, %p2100_p5  ;;  %p1568_p4 = scmp.lt.s32.totalorder %s1566_s22, %s1559_s1 }
  0x51   : > { %p1563_p6 = pneg %p1562_p1  ;;  %p1569_p3 = por %p1568_p4, %p1567_p9 }
  0x53   : > { %p1570_p13 = pnand %p1569_p3, %p1563_p6 }
  0x55   : > { %1573 = shalt.err (!%p1570_p13)
}
  0x56   : > { %1369 = dma.hbm_to_vmem [thread:$0]  (!%p1763_p7), %s287_s8, 256, %s289_s16, %s1773_s13, %s2099_s17, %s2099_s17, %s2098_s25  }
  0x57   : > { %300 = sbr.rel (%p1813_p2) target bundleno = 1710 (0x6ae), region = 40  ;;  %s1874_s28 = sand.u32 (!%p1813_p2), 1, %s1646_s19  }
  0x58   : > { %s1230_s0 = sshll.u32 (!%p1813_p2), %s1874_s28, 4  ;;  %s303_s30 = scalar_lea.sflag (!%p1813_p2), [#allocation7], %s1874_s28 }
  0x59   : > { %s1878_s15 = scalar_lea.vmem (!%p1813_p2), [#allocation6], %s1230_s0 }
  0x5c   : > { %1625 = dma.done.wait (%p1797_p11), %s303_s30, 256  }
  0x5d   : > { %1627 = vsyncadd (%p1797_p11), %s303_s30, 4294967040  ;;  %s311_s6 = sand.u32 1, %s1787_s7   ;;  %s1885_s12 = scalar_lea.vmem [#allocation9], %s1230_s0 }
  0x5e   : > { %s312_s13 = scalar_lea.sflag [#allocation10], %s311_s6 }
  0x5f   : > { %1629 = dma.done.wait (%p1797_p11), %s312_s13, 512  }
  0x60   : > { %1631 = vsyncadd (%p1797_p11), %s312_s13, 4294966784  ;;  %s1891_s25 = scalar_lea.vmem [#allocation11], %s1230_s0  ;;  %p2101_p7 = scmp.eq.s32.totalorder %s1787_s7, 0 }
  0x62   : > { %1633 = dma.done.wait (%p2101_p7), [#allocation13], 256   ;;  %p2102_p2 = pmov %p2101_p7 }
  0x63   : > { %vm379_vm0 = vcmask 64512   ;;  %v1670_v0 = vmov 0.0   ;;  %vm1671_vm1 = vmmov 0   ;;  %v385_v1 = vld [vmem:[%s1885_s12] sm:$0xf]  ;;  %vm370_vm2 = vcmask 7168  }
  0x64   : > { %1635 = vsyncadd (%p2102_p2), [#allocation13], 4294967040  ;;  %1288 = vmatprep.subr.bf16.mxu0 %v1670_v0  ;;  %380 = vst.msk [vmem:[#allocation4] sm:$0xff] %vm379_vm0, %v1670_v0  ;;  %1290 = vmatprep.mubr.msk.bf16.mxu0 %vm1671_vm1, %v1670_v0  ;;  %v392_v2 = vsel %vm379_vm0, %v385_v1, 0  ;;  %v384_v3 = vld [vmem:[%s1878_s15] sm:$0xf] }
  0x65   : > { %381 = vst.msk [vmem:[#allocation4 + $0x8] sm:$0xff] %vm379_vm0, %v1670_v0  ;;  %382 = vst.msk [vmem:[#allocation4 + $0x10] sm:$0xff] %vm379_vm0, %v1670_v0  ;;  %1294 = vmatprep.subr.bf16.mxu1 %v1670_v0  ;;  %1296 = vmatprep.mubr.msk.bf16.mxu1 %vm1671_vm1, %v1670_v0  ;;  %v1672_v4 = vmov -inf   ;;  %v1673_v10 = vmov 0   ;;  %v386_v15 = vld [vmem:[%s1891_s25] sm:$0xf] }
  0x66   : > { %383 = vst.msk [vmem:[#allocation4 + $0x18] sm:$0xff] %vm379_vm0, %v1670_v0  ;;  %1289 = vmatpush3.bf16.xpose.msra.mxu0 %v392_v2  ;;  %1436 = vset.pattern.permute.xlu0 %v1673_v10  ;;  %vm469_vm3 = vcmask 1043456   ;;  %v1238_v20 = vld [vmem:[%s1885_s12 + $0x4] sm:$0xf]  ;;  %v1243_v24 = vld [vmem:[%s1885_s12 + $0x8] sm:$0xf] }
  0x67   : > { %1306 = vmatprep.subr.bf16.mxu0 %v1670_v0  ;;  %371 = vst.msk [vmem:[#allocation2] sm:$0xff] %vm370_vm2, %v1672_v4  ;;  %372 = vst.msk [vmem:[#allocation2 + $0x8] sm:$0xff] %vm370_vm2, %v1672_v4  ;;  %1437 = vset.pattern.permute.xlu1 %v1673_v10  ;;  %v471_v16 = vsel %vm469_vm3, %v386_v15, 0  ;;  %v526_v23 = vsel %vm379_vm0, %v1238_v20, 0  ;;  %v1237_v25 = vld [vmem:[%s1878_s15 + $0x4] sm:$0xf] }
  0x68   : > { %373 = vst.msk [vmem:[#allocation2 + $0x10] sm:$0xff] %vm370_vm2, %v1672_v4  ;;  %374 = vst.msk [vmem:[#allocation2 + $0x18] sm:$0xff] %vm370_vm2, %v1672_v4  ;;  %1295 = vmatpush3.bf16.msra.mxu1 %v471_v16  ;;  %v661_v26 = vsel %vm379_vm0, %v1243_v24, 0  ;;  %v1248_v27 = vld [vmem:[%s1885_s12 + $0xc] sm:$0xf]  ;;  %s1674_s7 = smov 8  }
  0x69   : > { %375 = vst.msk [vmem:[#allocation3] sm:$0xff] %vm370_vm2, %v1670_v0  ;;  %376 = vst.msk [vmem:[#allocation3 + $0x8] sm:$0xff] %vm370_vm2, %v1670_v0  ;;  %1300 = vmatprep.subr.bf16.mxu1 %v1670_v0  ;;  %v1242_v28 = vld [vmem:[%s1878_s15 + $0x8] sm:$0xf]  ;;  %v796_v29 = vsel %vm379_vm0, %v1248_v27, 0  ;;  %s1675_s9 = smov 16  }
  0x6a   : > { %377 = vst.msk [vmem:[#allocation3 + $0x10] sm:$0xff] %vm370_vm2, %v1670_v0  ;;  %378 = vst.msk [vmem:[#allocation3 + $0x18] sm:$0xff] %vm370_vm2, %v1670_v0  ;;  %v1247_v30 = vld [vmem:[%s1878_s15 + $0xc] sm:$0xf]  ;;  %v1239_v59 = vld [vmem:[%s1891_s25 + $0x4] sm:$0xf] }
  0x6b   : > { %v606_v60 = vsel %vm469_vm3, %v1239_v59, 0  ;;  %s1676_s17 = smov 24   ;;  %vm934_vm4 = vcmask 60416   ;;  %vm952_vm5 = vcmask 126016   ;;  %vm970_vm6 = vcmask 191616   ;;  %s1234_s24 = sshll.u32 %s1874_s28, 3 }
  0x6c   : > { %vm988_vm7 = vcmask 257216   ;;  %vm1014_vm8 = vcmask 261120   ;;  %s1260_s8 = sshll.u32 %s1654_s21, 7  ;;  %s364_s14 = scalar_lea.vmem [#allocation14], %s1234_s24 }
  0x6d   : > { %1291 = vmatmul.mubr.msk.bf16.vlgmr.msra.gmra.mxu0 %vm379_vm0, %v384_v3  ;;  %s1074_s16 = sshll.u32 %s364_s14, 4  ;;  %s2021_s22 = scalar_lea.hbm %s2074_s5, %s1260_s8  ;;  %s2023_s16 = int_to_ptr.vmem [resolvable:$true] %s1074_s16 }
  0x6e   : > { %1308 = vmatprep.mubr.msk.bf16.mxu0 %vm1671_vm1, %v1670_v0  ;;  %v1931_v11 = vld [vmem:[#allocation2] sm:$0xff]  ;;  %v569_v50 = vld [vmem:[#allocation2 + $0x8] sm:$0xff]  ;;  %1307 = vmatpush3.bf16.msra.mxu0 %v606_v60  ;;  %s1060_s0 = scalar_lea.sflag [#allocation8], %s1874_s28  ;;  %s1574_s30 = scalar_lea.vmem %s2023_s16, 128 }
  0x6f   : > { %v704_v54 = vld [vmem:[#allocation2 + $0x10] sm:$0xff]  ;;  %v839_v58 = vld [vmem:[#allocation2 + $0x18] sm:$0xff]  ;;  %1318 = vmatprep.subr.bf16.mxu0 %v1670_v0  ;;  %p1575_p11 = scmp.ne.s32.totalorder %s2023_s16, %s1574_s30  ;;  %s1677_s21 = smov [#allocation14]  }
  0x70   : > { %s1578_s15 = sshll.u32 %s1677_s21, 4  ;;  %s1579_s15 = int_to_ptr.vmem [resolvable:$false] %s1578_s15 }
  0x71   : > { %p1576_p10 = pnand %p1575_p11, %p1804_p12  ;;  %s1580_s6 = scalar_lea.vmem %s1579_s15, 256 }
  0x72   : > { %p1581_p8 = scmp.lt.s32.totalorder %s2023_s16, %s1579_s15  ;;  %p1582_p5 = scmp.lt.s32.totalorder %s1580_s6, %s1574_s30 }
  0x73   : > { %p1577_p0 = pneg %p1576_p10 }
  0x74   : > { %p1583_p1 = por %p1582_p5, %p1581_p8 }
  0x76   : > { %p1584_p6 = pnand %p1583_p1, %p1577_p0 }
 0x12d   : > { %v428_v5 = vpop.f32.mrf.mxu0 }
 0x12e   : > { %v435_v6 = vsel %vm379_vm0, %v428_v5, -inf }
 0x12f   : > { %436 = vmax.xlane.f32.xlu0 %v435_v6  ;;  %v1292_v7 = vpop.f32.mrf.mxu0 }
 0x131   : > { %v431_v8 = vpop.f32.mrf.mxu0 }
 0x132   : > { %v1244_v8 = vld [vmem:[%s1891_s25 + $0x8] sm:$0xf] }
 0x133   : > { %v1293_v9 = vpop.f32.mrf.mxu0 }
 0x1b8   : > { %v437_v12 = vpop.xlane.xlu0 %436 }
 0x1b9   : > { %v1934_v13 = vmax.f32 %v1931_v11, %v437_v12 }
 0x1bb   : > { %v439_v14 = vsub.f32 %v1931_v11, %v1934_v13  ;;  %515 = vst.msk [vmem:[#allocation2] sm:$0xff] %vm370_vm2, %v1934_v13  ;;  %444 = vperm.xlu0 %1436, %v1934_v13   ;;  %v450_v11 = vld [vmem:[#allocation3] sm:$0xff] }
 0x236   : > { %v445_v17 = vpop.permute.xlu0 %444 }
 0x237   : > { %v447_v18 = vsub.f32 %v428_v5, %v445_v17  ;;  %v741_v17 = vsel %vm469_vm3, %v1244_v8, 0  ;;  %v864_v8 = vld [vmem:[#allocation4 + $0x18] sm:$0xff] }
 0x239   : > { %v448_v19 = vmul.f32 1.442695, %v447_v18  ;;  %v1249_v18 = vld [vmem:[%s1891_s25 + $0xc] sm:$0xf] }
 0x23b   : > { %1440 = vpow2.f32 %v448_v19 }
 0x248   : > { %v1945_v21 = vpop.eup %1440 }
 0x249   : > { %v465_v22 = vpack.c.bf16 %v1945_v21, %v1945_v21 }
 0x24b   : > { %1297 = vmatmul.mubr.msk.bf16.vlgmr.msra.gmra.mxu1 %vm379_vm0, %v465_v22 }
 0x24c   : > { %1301 = vmatpush3.bf16.xpose.msra.mxu1 %v526_v23  ;;  %1302 = vmatprep.mubr.msk.bf16.mxu1 %vm1671_vm1, %v1670_v0  ;;  %v876_v23 = vsel %vm469_vm3, %v1249_v18, 0 }
 0x24d   : > { %1312 = vmatprep.subr.bf16.mxu1 %v1670_v0 }
 0x253   : > { %1303 = vmatmul.mubr.msk.bf16.vlgmr.msra.gmra.mxu1 %vm379_vm0, %v1237_v25 }
 0x254   : > { %1313 = vmatpush3.bf16.xpose.msra.mxu1 %v661_v26  ;;  %1314 = vmatprep.mubr.msk.bf16.mxu1 %vm1671_vm1, %v1670_v0 }
 0x255   : > { %1324 = vmatprep.subr.bf16.mxu1 %v1670_v0 }
 0x25b   : > { %1315 = vmatmul.mubr.msk.bf16.vlgmr.msra.gmra.mxu1 %vm379_vm0, %v1242_v28 }
 0x25c   : > { %1325 = vmatpush3.bf16.xpose.msra.mxu1 %v796_v29  ;;  %1326 = vmatprep.mubr.msk.bf16.mxu1 %vm1671_vm1, %v1670_v0  ;;  %v452_v29 = vsel %vm379_vm0, %v1945_v21, 0.0  ;;  %v721_v21 = vld [vmem:[#allocation3 + $0x10] sm:$0xff] }
 0x25d   : > { %1336 = vmatprep.subr.bf16.mxu1 %v1670_v0 }
 0x263   : > { %1327 = vmatmul.mubr.msk.bf16.vlgmr.msra.gmra.mxu1 %vm379_vm0, %v1247_v30 }
 0x264   : > { %1340 = vmatprep.mubr.msk.bf16.mxu1 %vm1671_vm1, %v1670_v0 }
 0x30b   : > { %v1972_v31 = vpop.f32.mrf.mxu1 }
 0x30d   : > { %v1298_v32 = vpop.f32.mrf.mxu1 }
 0x30f   : > { %v510_v33 = vpop.f32.mrf.mxu1 }
 0x311   : > { %v1299_v34 = vpop.f32.mrf.mxu1 }
 0x313   : > { %v562_v35 = vpop.f32.mrf.mxu1 }
 0x314   : > { %v570_v36 = vsel %vm379_vm0, %v562_v35, -inf }
 0x315   : > { %571 = vmax.xlane.f32.xlu1 %v570_v36  ;;  %v1304_v37 = vpop.f32.mrf.mxu1  ;;  %v440_v36 = vmul.f32 1.442695, %v439_v14 }
 0x317   : > { %v565_v38 = vpop.f32.mrf.mxu1 }
 0x319   : > { %v1305_v39 = vpop.f32.mrf.mxu1 }
 0x31b   : > { %v697_v40 = vpop.f32.mrf.mxu1 }
 0x31c   : > { %v705_v41 = vsel %vm379_vm0, %v697_v40, -inf }
 0x31d   : > { %706 = vmax.xlane.f32.xlu1 %v705_v41  ;;  %v1316_v42 = vpop.f32.mrf.mxu1 }
 0x31f   : > { %v700_v43 = vpop.f32.mrf.mxu1 }
 0x321   : > { %v1317_v44 = vpop.f32.mrf.mxu1 }
 0x322   : > { %v856_v44 = vld [vmem:[#allocation3 + $0x18] sm:$0xff] }
 0x323   : > { %v832_v45 = vpop.f32.mrf.mxu1 }
 0x324   : > { %v840_v46 = vsel %vm379_vm0, %v832_v45, -inf }
 0x325   : > { %841 = vmax.xlane.f32.xlu1 %v840_v46  ;;  %v1328_v47 = vpop.f32.mrf.mxu1 }
 0x327   : > { %v835_v48 = vpop.f32.mrf.mxu1 }
 0x329   : > { %v1329_v49 = vpop.f32.mrf.mxu1 }
 0x39e   : > { %v572_v51 = vpop.xlane.xlu1 %571 }
 0x39f   : > { %v573_v52 = vmax.f32 %v569_v50, %v572_v51 }
 0x3a1   : > { %v574_v53 = vsub.f32 %v569_v50, %v573_v52  ;;  %650 = vst.msk [vmem:[#allocation2 + $0x8] sm:$0xff] %vm370_vm2, %v573_v52  ;;  %579 = vperm.xlu1 %1437, %v573_v52  }
 0x3a3   : > { %v575_v24 = vmul.f32 1.442695, %v574_v53 }
 0x3a6   : > { %v707_v55 = vpop.xlane.xlu1 %706 }
 0x3a7   : > { %v708_v56 = vmax.f32 %v704_v54, %v707_v55 }
 0x3a9   : > { %v709_v57 = vsub.f32 %v704_v54, %v708_v56  ;;  %785 = vst.msk [vmem:[#allocation2 + $0x10] sm:$0xff] %vm370_vm2, %v708_v56  ;;  %714 = vperm.xlu1 %1437, %v708_v56  }
 0x3ab   : > { %v710_v28 = vmul.f32 1.442695, %v709_v57  ;;  %v594_v57 = vld [vmem:[#allocation4 + $0x8] sm:$0xff] }
 0x3ae   : > { %v842_v61 = vpop.xlane.xlu1 %841 }
 0x3af   : > { %v843_v62 = vmax.f32 %v839_v58, %v842_v61 }
 0x3b1   : > { %v844_v63 = vsub.f32 %v839_v58, %v843_v62  ;;  %920 = vst.msk [vmem:[#allocation2 + $0x18] sm:$0xff] %vm370_vm2, %v843_v62  ;;  %849 = vperm.xlu1 %1437, %v843_v62  }
 0x3b3   : > { %v845_v30 = vmul.f32 1.442695, %v844_v63  ;;  %v729_v63 = vld [vmem:[#allocation4 + $0x10] sm:$0xff] }
 0x41c   : > { %v580_v1 = vpop.permute.xlu1 %579 }
 0x41d   : > { %v582_v2 = vsub.f32 %v562_v35, %v580_v1  ;;  %v586_v35 = vld [vmem:[#allocation3 + $0x8] sm:$0xff] }
 0x41f   : > { %v583_v3 = vmul.f32 1.442695, %v582_v2 }
 0x421   : > { %1442 = vpow2.f32 %v583_v3 }
 0x424   : > { %v715_v4 = vpop.permute.xlu1 %714 }
 0x425   : > { %v717_v5 = vsub.f32 %v697_v40, %v715_v4 }
 0x427   : > { %v718_v6 = vmul.f32 1.442695, %v717_v5 }
 0x429   : > { %1444 = vpow2.f32 %v718_v6 }
 0x42c   : > { %v850_v7 = vpop.permute.xlu1 %849 }
 0x42d   : > { %v852_v9 = vsub.f32 %v832_v45, %v850_v7 }
 0x42e   : > { %v1443_v10 = vpop.eup %1442 }
 0x42f   : > { %v853_v12 = vmul.f32 1.442695, %v852_v9  ;;  %v588_v15 = vsel %vm379_vm0, %v1443_v10, 0.0  ;;  %v601_v16 = vpack.c.bf16 %v1443_v10, %v1443_v10 }
 0x430   : > { %589 = vadd.xlane.f32.xlu1 %v588_v15 }
 0x431   : > { %1446 = vpow2.f32 %v853_v12  ;;  %1309 = vmatmul.mubr.msk.bf16.vlgmr.msra.gmra.mxu0 %vm379_vm0, %v601_v16 }
 0x432   : > { %1319 = vmatpush3.bf16.msra.mxu0 %v741_v17  ;;  %1320 = vmatprep.mubr.msk.bf16.mxu0 %vm1671_vm1, %v1670_v0  ;;  %1448 = vpow2.f32 %v575_v24 }
 0x433   : > { %1330 = vmatprep.subr.bf16.mxu0 %v1670_v0  ;;  %1450 = vpow2.f32 %v710_v28 }
 0x434   : > { %1452 = vpow2.f32 %v845_v30  ;;  %v1439_v30 = vld [vmem:[#allocation12] sm:$0xff]  }
 0x435   : > { %1454 = vpow2.f32 %v440_v36 }
 0x436   : > { %v1445_v19 = vpop.eup %1444 }
 0x437   : > { %v723_v20 = vsel %vm379_vm0, %v1445_v19, 0.0  ;;  %v736_v22 = vpack.c.bf16 %v1445_v19, %v1445_v19 }
 0x438   : > { %724 = vadd.xlane.f32.xlu0 %v723_v20 }
 0x439   : > { %1321 = vmatmul.mubr.msk.bf16.vlgmr.msra.gmra.mxu0 %vm379_vm0, %v736_v22 }
 0x43a   : > { %1331 = vmatpush3.bf16.msra.mxu0 %v876_v23  ;;  %1332 = vmatprep.mubr.msk.bf16.mxu0 %vm1671_vm1, %v1670_v0 }
 0x43e   : > { %v1447_v25 = vpop.eup %1446 }
 0x43f   : > { %v858_v26 = vsel %vm379_vm0, %v1447_v25, 0.0  ;;  %v871_v27 = vpack.c.bf16 %v1447_v25, %v1447_v25  ;;  %v1449_v32 = vpop.eup %1448 }
 0x440   : > { %859 = vadd.xlane.f32.xlu1 %v858_v26  ;;  %v1451_v33 = vpop.eup %1450  ;;  %v587_v37 = vmul.f32 %v1449_v32, %v586_v35  ;;  %v1438_v26 = vld [vmem:[#allocation12 + $0x8] sm:$0xff]  }
 0x441   : > { %1333 = vmatmul.mubr.msk.bf16.vlgmr.msra.gmra.mxu0 %vm379_vm0, %v871_v27  ;;  %v1453_v34 = vpop.eup %1452  ;;  %v722_v40 = vmul.f32 %v1451_v33, %v721_v21  ;;  %1337 = vmatpush3.bf16.msra.mxu1 %v1438_v26 }
 0x442   : > { %v857_v45 = vmul.f32 %v1453_v34, %v856_v44  ;;  %v1455_v46 = vpop.eup %1454  ;;  %1338 = vmatprep.subr.bf16.mxu1 %v1670_v0 }
 0x443   : > { %v451_v48 = vmul.f32 %v1455_v46, %v450_v11 }
 0x444   : > { %453 = vadd.xlane.f32.xlu1 %v452_v29 }
 0x445   : > { %1339 = vmatpush3.bf16.msra.mxu1 %v1439_v30 }
 0x44e   : > { %597 = vperm.xlu0 %1436, %v1449_v32   ;;  %v458_v32 = vld [vmem:[#allocation4] sm:$0xff] }
 0x455   : > { %732 = vperm.xlu1 %1437, %v1451_v33  }
 0x459   : > { %867 = vperm.xlu1 %1437, %v1453_v34  }
 0x4b9   : > { %v590_v38 = vpop.xlane.xlu1 %589 }
 0x4ba   : > { %v591_v39 = vadd.f32 %v590_v38, %v587_v37 }
 0x4bc   : > { %592 = vst.msk [vmem:[#allocation3 + $0x8] sm:$0xff] %vm370_vm2, %v591_v39 }
 0x4c1   : > { %v725_v41 = vpop.xlane.xlu0 %724 }
 0x4c2   : > { %v726_v42 = vadd.f32 %v725_v41, %v722_v40 }
 0x4c3   : > { %v936_v43 = vld [vmem:[#allocation3 + $0x8] sm:$0xff] }
 0x4c4   : > { %727 = vst.msk [vmem:[#allocation3 + $0x10] sm:$0xff] %vm370_vm2, %v726_v42  ;;  %1456 = vrcp.f32 %v936_v43 }
 0x4c9   : > { %v860_v47 = vpop.xlane.xlu1 %859  ;;  %v598_v58 = vpop.permute.xlu0 %597 }
 0x4ca   : > { %v861_v13 = vadd.f32 %v860_v47, %v857_v45  ;;  %v600_v59 = vmul.f32 %v598_v58, %v594_v57 }
 0x4cb   : > { %v954_v14 = vld [vmem:[#allocation3 + $0x10] sm:$0xff] }
 0x4cc   : > { %862 = vst.msk [vmem:[#allocation3 + $0x18] sm:$0xff] %vm370_vm2, %v861_v13  ;;  %1458 = vrcp.f32 %v954_v14 }
 0x4cd   : > { %v454_v49 = vpop.xlane.xlu1 %453 }
 0x4ce   : > { %v455_v50 = vadd.f32 %v454_v49, %v451_v48 }
 0x4d0   : > { %457 = vst.msk [vmem:[#allocation3] sm:$0xff] %vm370_vm2, %v455_v50 }
 0x4d1   : > { %v1457_v51 = vpop.eup %1456  ;;  %v733_v1 = vpop.permute.xlu1 %732 }
 0x4d2   : > { %941 = vperm.xlu0 %1436, %v1457_v51   ;;  %v735_v4 = vmul.f32 %v733_v1, %v729_v63 }
 0x4d3   : > { %v972_v52 = vld [vmem:[#allocation3 + $0x18] sm:$0xff] }
 0x4d4   : > { %1460 = vrcp.f32 %v972_v52 }
 0x4d5   : > { %v868_v9 = vpop.permute.xlu1 %867 }
 0x4d6   : > { %v870_v15 = vmul.f32 %v868_v9, %v864_v8 }
 0x4d7   : > { %v924_v53 = vld [vmem:[#allocation3] sm:$0xff] }
 0x4d8   : > { %1462 = vrcp.f32 %v924_v53 }
 0x4d9   : > { %v1459_v54 = vpop.eup %1458 }
 0x4da   : > { %959 = vperm.xlu1 %1437, %v1459_v54  }
 0x4de   : > { %461 = vperm.xlu1 %1437, %v1455_v46   ;;  %v1255_v46 = vld [vmem:[%s2073_s4] ss:$0 sm:$0xff] }
 0x4e1   : > { %v1461_v55 = vpop.eup %1460 }
 0x4e2   : > { %977 = vperm.xlu0 %1436, %v1461_v55  }
 0x4e5   : > { %v1463_v56 = vpop.eup %1462 }
 0x4e6   : > { %929 = vperm.xlu0 %1436, %v1463_v56  }
 0x4f1   : > { %v642_v60 = vpop.f32.mrf.mxu0 }
 0x4f2   : > { %v648_v61 = vadd.f32 %v642_v60, %v600_v59 }
 0x4f3   : > { %v1310_v62 = vpop.f32.mrf.mxu0 }
 0x4f4   : > { %649 = vst.msk [vmem:[#allocation4 + $0x8] sm:$0xff] %vm379_vm0, %v648_v61 }
 0x4f5   : > { %v645_v2 = vpop.f32.mrf.mxu0 }
 0x4f7   : > { %v1311_v3 = vpop.f32.mrf.mxu0 }
 0x4f9   : > { %v777_v5 = vpop.f32.mrf.mxu0 }
 0x4fa   : > { %v783_v6 = vadd.f32 %v777_v5, %v735_v4 }
 0x4fb   : > { %v1322_v7 = vpop.f32.mrf.mxu0  ;;  %v938_v22 = vld [vmem:[#allocation4 + $0x8] sm:$0xff] }
 0x4fc   : > { %784 = vst.msk [vmem:[#allocation4 + $0x10] sm:$0xff] %vm379_vm0, %v783_v6 }
 0x4fd   : > { %v780_v10 = vpop.f32.mrf.mxu0 }
 0x4ff   : > { %v1323_v12 = vpop.f32.mrf.mxu0 }
 0x501   : > { %v912_v16 = vpop.f32.mrf.mxu0 }
 0x502   : > { %v918_v17 = vadd.f32 %v912_v16, %v870_v15 }
 0x503   : > { %v1334_v18 = vpop.f32.mrf.mxu0  ;;  %v956_v27 = vld [vmem:[#allocation4 + $0x10] sm:$0xff] }
 0x504   : > { %919 = vst.msk [vmem:[#allocation4 + $0x18] sm:$0xff] %vm379_vm0, %v918_v17 }
 0x505   : > { %v915_v19 = vpop.f32.mrf.mxu0 }
 0x507   : > { %v1335_v20 = vpop.f32.mrf.mxu0 }
 0x50b   : > { %v974_v38 = vld [vmem:[#allocation4 + $0x18] sm:$0xff] }
 0x54d   : > { %v942_v23 = vpop.permute.xlu0 %941 }
 0x54e   : > { %v944_v24 = vmul.f32 %v942_v23, %v938_v22 }
 0x550   : > { %v1266_v25 = vpack.c.bf16 %v944_v24, %v944_v24 }
 0x552   : > { %949 = vrot.lane.b32.xlu1 %v1266_v25, %s1674_s7 }
 0x555   : > { %v960_v28 = vpop.permute.xlu1 %959 }
 0x556   : > { %v962_v29 = vmul.f32 %v960_v28, %v956_v27 }
 0x558   : > { %v1267_v33 = vpack.c.bf16 %v962_v29, %v962_v29 }
 0x559   : > { %v462_v34 = vpop.permute.xlu1 %461 }
 0x55a   : > { %v464_v35 = vmul.f32 %v462_v34, %v458_v32  ;;  %967 = vrot.lane.b32.xlu0 %v1267_v33, %s1675_s9 }
 0x55c   : > { %v513_v36 = vadd.f32 %v1972_v31, %v464_v35 }
 0x55d   : > { %v978_v37 = vpop.permute.xlu0 %977 }
 0x55e   : > { %514 = vst.msk [vmem:[#allocation4] sm:$0xff] %vm379_vm0, %v513_v36  ;;  %v980_v39 = vmul.f32 %v978_v37, %v974_v38 }
 0x560   : > { %v1268_v21 = vpack.c.bf16 %v980_v39, %v980_v39 }
 0x561   : > { %v930_v41 = vpop.permute.xlu0 %929 }
 0x562   : > { %985 = vrot.lane.b32.xlu1 %v1268_v21, %s1676_s17 }
 0x565   : > { %v926_v40 = vld [vmem:[#allocation4] sm:$0xff] }
 0x566   : > { %v932_v42 = vmul.f32 %v930_v41, %v926_v40 }
 0x568   : > { %v933_v0 = vpack.c.bf16 %v932_v42, %v932_v42 }
 0x56a   : > { %935 = vst.msk [vmem:[#allocation5] sm:$0xf] %vm934_vm4, %v933_v0 }
 0x5c4   : > { %v950_v43 = vpop.permute.xlu1 %949 }
 0x5c5   : > { %953 = vst.msk [vmem:[#allocation5] sm:$0xf] %vm952_vm5, %v950_v43 }
 0x5cc   : > { %v968_v31 = vpop.permute.xlu0 %967 }
 0x5cd   : > { %971 = vst.msk [vmem:[#allocation5] sm:$0xf] %vm970_vm6, %v968_v31 }
 0x5d4   : > { %v986_v44 = vpop.permute.xlu1 %985 }
 0x5d5   : > { %989 = vst.msk [vmem:[#allocation5] sm:$0xf] %vm988_vm7, %v986_v44 }
 0x5dc   : > { %v990_v45 = vld [vmem:[#allocation5] sm:$0xf] }
 0x5dd   : > { %1341 = vmatmul.mubr.msk.bf16.vlgmr.msra.gmra.mxu1 %vm1014_vm8, %v990_v45 }
 0x69d   : > { %v1052_v47 = vpop.f32.mrf.mxu1 }
 0x69e   : > { %v1053_v11 = vadd.f32 %v1255_v46, %v1052_v47 }
 0x69f   : > { %v1342_v13 = vpop.f32.mrf.mxu1 }
 0x6a0   : > { %1058 = vst [vmem:[%s364_s14] sm:$0xff] %v1053_v11 }
 0x6a1   : > { %v1055_v14 = vpop.f32.mrf.mxu1 }
 0x6a2   : > { %1587 = shalt.err (!%p1584_p6)
}
 0x6a3   : > { %s1588_s13 = scalar_lea.hbm %s2021_s22, 128  ;;  %s1592_s25 = scalar_lea.hbm %s2074_s5, 256 }
 0x6a4   : > { %p1589_p9 = scmp.ne.s32.totalorder %s2021_s22, %s1588_s13  ;;  %p1593_p13 = scmp.lt.s32.totalorder %s2021_s22, %s2074_s5 }
 0x6a5   : > { %p1594_p7 = scmp.lt.s32.totalorder %s1592_s25, %s1588_s13 }
 0x6a6   : > { %p1590_p4 = pnand %p1589_p9, %p1804_p12 }
 0x6a7   : > { %p1595_p2 = por %p1594_p7, %p1593_p13 }
 0x6a8   : > { %p1591_p3 = pneg %p1590_p4 }
 0x6aa   : > { %p1596_p11 = pnand %p1595_p2, %p1591_p3 }
 0x6ac   : > { %1599 = shalt.err (!%p1596_p11)
}
 0x6ad   : > { %1354 = dma.vmem_to_hbm [thread:$0]  (%p1804_p12), %s2023_s16, 128, %s2021_s22, %s1060_s0   ;;  %v1343_v48 = vpop.f32.mrf.mxu1 }
 0x6ae PF: > { %s1086_s17 = sand.u32 1, %s1642_s18   ;;  %p2103_p10 = scmp.ne.s32.totalorder %s2093_s11, 0 }
 0x6af   : > { %p2104_p0 = scmp.ge.s32.totalorder %s1662_s23, 2  ;;  %s1087_s24 = scalar_lea.sflag [#allocation8], %s1086_s17 }
 0x6b1   : > { %p1371_p8 = pnand %p2104_p0, %p2103_p10 }
 0x6b3   : > { %p1372_p5 = pneg %p1371_p8 }
 0x6b5   : > { %1637 = dma.done.wait (%p1372_p5), %s1087_s24, 128  }
 0x6b6   : > { %1639 = vsyncadd (%p1372_p5), %s1087_s24, 4294967168  ;;  %s25_s23 = sadd.s32 1, %s1662_s23   ;;  %s2105_s10 = sld [smem:[#allocation21_spill]] }
 0x6b7   : > { %p22_p1 = scmp.ge.s32.totalorder %s25_s23, 4   ;;  %s2106_s21 = sld [smem:[#allocation19_spill]] }
 0x6b8   : > { %s2107_s22 = sld [smem:[#allocation20_spill]]  ;;  %s2108_s18 = smov %s1646_s19 }
 0x6b9   : > { %s2109_s19 = smov %s1650_s20  ;;  %24 = sbr.rel (!%p22_p1) target bundleno = 12 (0xc), region = 139 }
 0x6bc   : > { %s2110_s20 = smov %s2105_s10 }
 0x6be   :  { %1092 = vsyncpa [#allocation7], 1 }
 0x6bf   :  { %1094 = vsyncpa [#allocation7 + $0x1], 1 }
 0x6c0   :  { %1095 = vsyncpa [#allocation10], 1 }
 0x6c1   :  { %1097 = vsyncpa [#allocation10 + $0x1], 1 }
 0x6c2   :  { %1098 = vsyncpa [#allocation13], 1 }
 0x6c3   :  { %1099 = vsyncpa [#allocation8], 1 }
 0x6c4   :  { %1101 = vsyncpa [#allocation8 + $0x1], 1 }

</bundles_post_ra>
